<compile_context>
chip_gen: v5e
topology: v5e:2x2
jax: 0.10.0
libtpu: 0.0.40
codegen_flags: <defaults>
</compile_context>

<pallas_src>
import functools
import math

import numpy as np
import jax
import jax.numpy as jnp
from jax.experimental import pallas as pl
from jax.experimental.pallas import tpu as pltpu


# ----------------------------------------------------------------------------
# Pallas kernel: full AE forward (8 pre-masked linears + activations) for one
# batch tile.  Weights/biases stay VMEM-resident across the batch grid
# (constant index_map -> loaded once, reused every grid step).
# ----------------------------------------------------------------------------
def _ae_forward_kernel(apply_sigmoid, out_dims, x_ref, *refs):
    # refs layout: [w0, w1, ..., w7, bias_mat, out_ref]
    out_ref = refs[-1]
    w_refs = refs[:8]
    b_ref = refs[8]                       # (8, max_out), zero-padded rows

    h = x_ref[...].astype(jnp.float32)
    for li in range(8):
        w = w_refs[li][...]                                   # mask already folded in
        h = jnp.dot(h, w, preferred_element_type=jnp.float32)
        h = h + b_ref[li:li + 1, 0:out_dims[li]]              # static slice, (1, out)
        # ReLU after every layer except encoder fc4 (li==3, latent z) and
        # decoder fc1 (li==7, reconstruction) -- matches the PyTorch module.
        if li not in (3, 7):
            h = jnp.maximum(h, 0.0)
    if apply_sigmoid:
        # NOTE: if profiling shows a VALU-bound epilogue, this can be swapped
        # for exp + pl.reciprocal(..., approx=True) to land on the idle EUP
        # slot; kept exact here to match the f32 reference tightly.
        h = jax.nn.sigmoid(h)
    out_ref[...] = h.astype(out_ref.dtype)


def _round_up(v, m):
    return ((v + m - 1) // m) * m


def _pick_tile_b(B, x_dim, max_out, resident_bytes, vmem_budget_bytes):
    """Largest sublane-aligned batch tile that fits the VMEM budget
    (double-buffered x/out blocks + f32 intermediates + resident params),
    capped to the 1024-4096 sweet spot.  For small batches, split into >=2
    grid steps so v7x's second TensorCore gets work."""
    per_row = 6 * max(x_dim, max_out) * 4          # x(dbuf) + out(dbuf) + intermediates
    avail = max(vmem_budget_bytes - resident_bytes, 8 * per_row)
    t = max(8, min(4096, avail // per_row))
    t = (t // 8) * 8
    if t >= B:                                     # whole batch fits in one tile
        if B > 8:
            t = _round_up((B + 1) // 2, 8)         # >=2 grid steps (v7x: 2 TCs)
        else:
            t = 8
    return int(t)


def make_ae_forward(masked_weights_t, biases, *, sigmoid=True, tile_b=None,
                    vmem_budget_bytes=20 * 1024 * 1024,
                    vmem_limit_bytes=32 * 1024 * 1024):
    """Build a jitted forward pass.  All per-call host glue (bias packing,
    weight folding) is hoisted here so the hot path is a single pallas_call.

    masked_weights_t: 8 arrays (in, out) with the 0/1 masks already folded in.
    biases: 8 arrays (out,).
    """
    out_dims = tuple(int(w.shape[1]) for w in masked_weights_t)
    in_dims = tuple(int(w.shape[0]) for w in masked_weights_t)
    x_dim = in_dims[0]
    assert out_dims[-1] == x_dim, "decoder output must match x_dim"

    max_out = max(out_dims)
    # Pack all 8 biases into one zero-padded (8, max_out) matrix: a single DMA
    # instead of 8 sub-KiB descriptor-bound transfers.  Built ONCE, not per call.
    bias_np = np.zeros((8, max_out), np.float32)
    for i, b in enumerate(biases):
        bias_np[i, :out_dims[i]] = np.asarray(b, np.float32)
    bias_mat = jnp.asarray(bias_np)

    weights = tuple(jnp.asarray(w, jnp.float32) for w in masked_weights_t)
    # TODO(synk): optional bf16 cast of weights/activations (2x less DMA, native
    # MXU on v6e/v7x) is an intentional numerics change; kept f32 here.

    resident_bytes = sum(int(np.prod(w.shape)) * 4 for w in weights) + 8 * max_out * 4
    layer_flops = 2 * sum(i * o for i, o in zip(in_dims, out_dims))

    kernel = functools.partial(_ae_forward_kernel, bool(sigmoid), out_dims)

    @jax.jit
    def _forward(params, x):
        ws, b_mat = params
        B = int(x.shape[0])                                   # static under jit
        t = tile_b if tile_b is not None else _pick_tile_b(
            B, x_dim, max_out, resident_bytes, vmem_budget_bytes)
        t = max(8, (int(t) // 8) * 8)
        padded_B = _round_up(B, t)
        xp = x if padded_B == B else jnp.pad(x, ((0, padded_B - B), (0, 0)))
        grid = (padded_B // t,)

        x_spec = pl.BlockSpec((t, x_dim), lambda i: (i, 0))
        # Same block index every step -> parameters stay resident in VMEM.
        w_specs = [pl.BlockSpec(tuple(w.shape), lambda i: (0, 0)) for w in ws]
        b_spec = pl.BlockSpec((8, max_out), lambda i: (0, 0))
        out_spec = pl.BlockSpec((t, x_dim), lambda i: (i, 0))

        cost = pl.CostEstimate(
            flops=padded_B * layer_flops,
            transcendentals=(padded_B * x_dim) if sigmoid else 0,
            bytes_accessed=2 * padded_B * x_dim * 4 + resident_bytes)

        out = pl.pallas_call(
            kernel,
            out_shape=jax.ShapeDtypeStruct((padded_B, x_dim), jnp.float32),
            grid=grid,
            in_specs=[x_spec] + w_specs + [b_spec],
            out_specs=out_spec,
            compiler_params=pltpu.CompilerParams(
                dimension_semantics=("parallel",),       # split batch over 2 TCs on v7x
                vmem_limit_bytes=vmem_limit_bytes),
            cost_estimate=cost,
        )(xp, *ws, b_mat)
        return out[:B]

    params = (weights, bias_mat)

    def forward(x):
        return _forward(params, x)

    return forward


# ----------------------------------------------------------------------------
# Glue: Get_SVS2_subnet.forward (sort-based 0/1 mask), done once with concrete
# values — weight preprocessing, not part of the per-call hot path.
# ----------------------------------------------------------------------------
def get_svs2_subnet(scores, var_sparsity, global_sparsity):
    s = np.abs(np.asarray(scores, dtype=np.float32))
    k = 1.0 - math.tanh(float(global_sparsity) * float(var_sparsity) ** 2)
    flat = s.reshape(-1)
    idx = np.argsort(flat, kind="stable")
    j = int((1.0 - k) * flat.size)
    out = np.empty_like(flat, dtype=np.float32)
    out[idx[:j]] = 0.0
    out[idx[j:]] = 1.0
    return out.reshape(s.shape)
    # TODO(synk): sort/top-k has no clean Pallas TPU primitive; mask built in host glue.


# ----------------------------------------------------------------------------
# Deterministic parameter construction (mirrors module __init__ shapes/inits).
# ----------------------------------------------------------------------------
def build_params(key, layer_dims):
    """layer_dims: 8 (in_features, out_features) tuples (PyTorch W is (out, in))."""
    weights_t, scores_list, biases = [], [], []
    for (fan_in, fan_out) in layer_dims:
        key, kw, ks, kb = jax.random.split(key, 4)
        # kaiming_normal_(weight, mode='fan_in', relu): std = sqrt(2/fan_in)
        w = jax.random.normal(kw, (fan_in, fan_out), jnp.float32) * np.sqrt(2.0 / fan_in)
        # kaiming_uniform_(scores, a=sqrt(5)): bound = 1/sqrt(fan_in)
        bound_s = 1.0 / np.sqrt(fan_in)
        s = jax.random.uniform(ks, (fan_in, fan_out), jnp.float32, -bound_s, bound_s)
        # nn.Linear default bias init: U(-1/sqrt(fan_in), 1/sqrt(fan_in))
        bound_b = 1.0 / np.sqrt(fan_in)
        b = jax.random.uniform(kb, (fan_out,), jnp.float32, -bound_b, bound_b)
        weights_t.append(w)
        scores_list.append(s)
        biases.append(b)
    return key, weights_t, scores_list, biases


# ----------------------------------------------------------------------------
# Pure-JAX reference (for correctness check of the kernel).
# ----------------------------------------------------------------------------
def reference_forward(x, weights_t, masks_t, biases, sigmoid=True):
    h = x
    for li, (w, m, b) in enumerate(zip(weights_t, masks_t, biases)):
        h = h @ (w * m) + b
        if li not in (3, 7):
            h = jnp.maximum(h, 0.0)
    if sigmoid:
        h = jax.nn.sigmoid(h)
    return h


if __name__ == "__main__":
    # Small AE dimensions (consistent with the MLP autoencoder structure).
    x_dim, h1, h2, h3, h4 = 256, 128, 64, 32, 16
    batch = 256                       # multiple of the chosen tile -> no pad op
    sigmoid = True
    global_sparsity = 1.0
    weights_to_prune = "12345678"     # all 8 layers are Supermask linears

    layer_dims = [
        (x_dim, h1), (h1, h2), (h2, h3), (h3, h4),   # encoder fc1..fc4
        (h4, h3), (h3, h2), (h2, h1), (h1, x_dim),   # decoder fc4..fc1
    ]

    key = jax.random.PRNGKey(0)
    # self.sparsity_ratios = randn(len(weights_to_prune)); index maps layer -> position
    key, kr = jax.random.split(key)
    sparsity_ratios = np.asarray(
        jax.random.normal(kr, (len(weights_to_prune),), jnp.float32))

    key, weights_t, scores_list, biases = build_params(key, layer_dims)

    # Build 0/1 subnet masks per layer (Get_SVS2_subnet on |scores|) and fold
    # them into the weights once (exact: masks are {0,1}).
    masks_t, masked_weights = [], []
    for li in range(8):
        var_sparsity = sparsity_ratios[li]   # index[str(li+1)] == li
        m = jnp.asarray(get_svs2_subnet(
            np.asarray(scores_list[li]), var_sparsity, global_sparsity))
        masks_t.append(m)
        masked_weights.append(weights_t[li] * m)

    # Input
    key, kx = jax.random.split(key)
    x = jax.random.normal(kx, (batch, x_dim), jnp.float32)

    # All host-side preprocessing (bias packing, weight fold) happens once here;
    # `forward` is a jitted single-pallas_call hot path.
    forward = make_ae_forward(masked_weights, biases, sigmoid=sigmoid)

    out = jax.block_until_ready(forward(x))

    ref = reference_forward(x, weights_t, masks_t, biases, sigmoid=sigmoid)
    assert out.shape == (batch, x_dim)
    np.testing.assert_allclose(np.asarray(out), np.asarray(ref), rtol=1e-5, atol=1e-5)

    print("KERNEL_OK")
</pallas_src>

<mosaic_0001>
module attributes {stable_mosaic.version = 11 : i64} {
  func.func @_ae_forward_kernel(%arg0: i32, %arg1: memref<128x256xf32, #tpu.memory_space<vmem>>, %arg2: memref<256x128xf32, #tpu.memory_space<vmem>>, %arg3: memref<128x64xf32, #tpu.memory_space<vmem>>, %arg4: memref<64x32xf32, #tpu.memory_space<vmem>>, %arg5: memref<32x16xf32, #tpu.memory_space<vmem>>, %arg6: memref<16x32xf32, #tpu.memory_space<vmem>>, %arg7: memref<32x64xf32, #tpu.memory_space<vmem>>, %arg8: memref<64x128xf32, #tpu.memory_space<vmem>>, %arg9: memref<128x256xf32, #tpu.memory_space<vmem>>, %arg10: memref<8x256xf32, #tpu.memory_space<vmem>>, %arg11: memref<128x256xf32, #tpu.memory_space<vmem>>) attributes {dimension_semantics = [#tpu.dimension_semantics<parallel>], iteration_bounds = array<i64: 2>, scalar_prefetch = 0 : i64, scratch_operands = 0 : i64, tpu.core_type = #tpu.core_type<tc>, window_params = [{transform_indices = @transform_0, window_bounds = array<i64: 128, 256>}, {pipeline_mode = #tpu.pipeline_mode<synchronous>, transform_indices = @transform_1, window_bounds = array<i64: 256, 128>}, {pipeline_mode = #tpu.pipeline_mode<synchronous>, transform_indices = @transform_2, window_bounds = array<i64: 128, 64>}, {pipeline_mode = #tpu.pipeline_mode<synchronous>, transform_indices = @transform_3, window_bounds = array<i64: 64, 32>}, {pipeline_mode = #tpu.pipeline_mode<synchronous>, transform_indices = @transform_4, window_bounds = array<i64: 32, 16>}, {pipeline_mode = #tpu.pipeline_mode<synchronous>, transform_indices = @transform_5, window_bounds = array<i64: 16, 32>}, {pipeline_mode = #tpu.pipeline_mode<synchronous>, transform_indices = @transform_6, window_bounds = array<i64: 32, 64>}, {pipeline_mode = #tpu.pipeline_mode<synchronous>, transform_indices = @transform_7, window_bounds = array<i64: 64, 128>}, {pipeline_mode = #tpu.pipeline_mode<synchronous>, transform_indices = @transform_8, window_bounds = array<i64: 128, 256>}, {pipeline_mode = #tpu.pipeline_mode<synchronous>, transform_indices = @transform_9, window_bounds = array<i64: 8, 256>}, {transform_indices = @transform_10, window_bounds = array<i64: 128, 256>}]} {
    %c0 = arith.constant 0 : index
    %c0_0 = arith.constant 0 : index
    %0 = vector.load %arg1[%c0, %c0_0] : memref<128x256xf32, #tpu.memory_space<vmem>>, vector<128x256xf32>
    %c0_1 = arith.constant 0 : index
    %c0_2 = arith.constant 0 : index
    %1 = vector.load %arg2[%c0_1, %c0_2] : memref<256x128xf32, #tpu.memory_space<vmem>>, vector<256x128xf32>
    %cst = arith.constant dense<0.000000e+00> : vector<128x128xf32>
    %2 = tpu.matmul %0, %1, %cst {dimension_numbers = #tpu.dot_dimension_numbers<[1], [0], [0], [1], [0, 0, 1, 1], [], []>} : vector<128x256xf32>, vector<256x128xf32>, vector<128x128xf32> -> vector<128x128xf32>
    %c0_3 = arith.constant 0 : index
    %c0_4 = arith.constant 0 : index
    %3 = vector.load %arg10[%c0_3, %c0_4] : memref<8x256xf32, #tpu.memory_space<vmem>>, vector<1x128xf32>
    %4 = vector.broadcast %3 : vector<1x128xf32> to vector<128x128xf32>
    %5 = arith.addf %2, %4 : vector<128x128xf32>
    %cst_5 = arith.constant 0.000000e+00 : f32
    %6 = vector.broadcast %cst_5 : f32 to vector<128x128xf32>
    %7 = arith.maximumf %5, %6 : vector<128x128xf32>
    %c0_6 = arith.constant 0 : index
    %c0_7 = arith.constant 0 : index
    %8 = vector.load %arg3[%c0_6, %c0_7] : memref<128x64xf32, #tpu.memory_space<vmem>>, vector<128x64xf32>
    %cst_8 = arith.constant dense<0.000000e+00> : vector<128x64xf32>
    %9 = tpu.matmul %7, %8, %cst_8 {dimension_numbers = #tpu.dot_dimension_numbers<[1], [0], [0], [1], [0, 0, 1, 1], [], []>} : vector<128x128xf32>, vector<128x64xf32>, vector<128x64xf32> -> vector<128x64xf32>
    %c1 = arith.constant 1 : index
    %c0_9 = arith.constant 0 : index
    %10 = vector.load %arg10[%c1, %c0_9] : memref<8x256xf32, #tpu.memory_space<vmem>>, vector<1x64xf32>
    %11 = vector.broadcast %10 : vector<1x64xf32> to vector<128x64xf32>
    %12 = arith.addf %9, %11 : vector<128x64xf32>
    %cst_10 = arith.constant 0.000000e+00 : f32
    %13 = vector.broadcast %cst_10 : f32 to vector<128x64xf32>
    %14 = arith.maximumf %12, %13 : vector<128x64xf32>
    %c0_11 = arith.constant 0 : index
    %c0_12 = arith.constant 0 : index
    %15 = vector.load %arg4[%c0_11, %c0_12] : memref<64x32xf32, #tpu.memory_space<vmem>>, vector<64x32xf32>
    %cst_13 = arith.constant dense<0.000000e+00> : vector<128x32xf32>
    %16 = tpu.matmul %14, %15, %cst_13 {dimension_numbers = #tpu.dot_dimension_numbers<[1], [0], [0], [1], [0, 0, 1, 1], [], []>} : vector<128x64xf32>, vector<64x32xf32>, vector<128x32xf32> -> vector<128x32xf32>
    %c2 = arith.constant 2 : index
    %c0_14 = arith.constant 0 : index
    %17 = vector.load %arg10[%c2, %c0_14] : memref<8x256xf32, #tpu.memory_space<vmem>>, vector<1x32xf32>
    %18 = vector.broadcast %17 : vector<1x32xf32> to vector<128x32xf32>
    %19 = arith.addf %16, %18 : vector<128x32xf32>
    %cst_15 = arith.constant 0.000000e+00 : f32
    %20 = vector.broadcast %cst_15 : f32 to vector<128x32xf32>
    %21 = arith.maximumf %19, %20 : vector<128x32xf32>
    %c0_16 = arith.constant 0 : index
    %c0_17 = arith.constant 0 : index
    %22 = vector.load %arg5[%c0_16, %c0_17] : memref<32x16xf32, #tpu.memory_space<vmem>>, vector<32x16xf32>
    %cst_18 = arith.constant dense<0.000000e+00> : vector<128x16xf32>
    %23 = tpu.matmul %21, %22, %cst_18 {dimension_numbers = #tpu.dot_dimension_numbers<[1], [0], [0], [1], [0, 0, 1, 1], [], []>} : vector<128x32xf32>, vector<32x16xf32>, vector<128x16xf32> -> vector<128x16xf32>
    %c3 = arith.constant 3 : index
    %c0_19 = arith.constant 0 : index
    %24 = vector.load %arg10[%c3, %c0_19] : memref<8x256xf32, #tpu.memory_space<vmem>>, vector<1x16xf32>
    %25 = vector.broadcast %24 : vector<1x16xf32> to vector<128x16xf32>
    %26 = arith.addf %23, %25 : vector<128x16xf32>
    %c0_20 = arith.constant 0 : index
    %c0_21 = arith.constant 0 : index
    %27 = vector.load %arg6[%c0_20, %c0_21] : memref<16x32xf32, #tpu.memory_space<vmem>>, vector<16x32xf32>
    %cst_22 = arith.constant dense<0.000000e+00> : vector<128x32xf32>
    %28 = tpu.matmul %26, %27, %cst_22 {dimension_numbers = #tpu.dot_dimension_numbers<[1], [0], [0], [1], [0, 0, 1, 1], [], []>} : vector<128x16xf32>, vector<16x32xf32>, vector<128x32xf32> -> vector<128x32xf32>
    %c4 = arith.constant 4 : index
    %c0_23 = arith.constant 0 : index
    %29 = vector.load %arg10[%c4, %c0_23] : memref<8x256xf32, #tpu.memory_space<vmem>>, vector<1x32xf32>
    %30 = vector.broadcast %29 : vector<1x32xf32> to vector<128x32xf32>
    %31 = arith.addf %28, %30 : vector<128x32xf32>
    %cst_24 = arith.constant 0.000000e+00 : f32
    %32 = vector.broadcast %cst_24 : f32 to vector<128x32xf32>
    %33 = arith.maximumf %31, %32 : vector<128x32xf32>
    %c0_25 = arith.constant 0 : index
    %c0_26 = arith.constant 0 : index
    %34 = vector.load %arg7[%c0_25, %c0_26] : memref<32x64xf32, #tpu.memory_space<vmem>>, vector<32x64xf32>
    %cst_27 = arith.constant dense<0.000000e+00> : vector<128x64xf32>
    %35 = tpu.matmul %33, %34, %cst_27 {dimension_numbers = #tpu.dot_dimension_numbers<[1], [0], [0], [1], [0, 0, 1, 1], [], []>} : vector<128x32xf32>, vector<32x64xf32>, vector<128x64xf32> -> vector<128x64xf32>
    %c5 = arith.constant 5 : index
    %c0_28 = arith.constant 0 : index
    %36 = vector.load %arg10[%c5, %c0_28] : memref<8x256xf32, #tpu.memory_space<vmem>>, vector<1x64xf32>
    %37 = vector.broadcast %36 : vector<1x64xf32> to vector<128x64xf32>
    %38 = arith.addf %35, %37 : vector<128x64xf32>
    %cst_29 = arith.constant 0.000000e+00 : f32
    %39 = vector.broadcast %cst_29 : f32 to vector<128x64xf32>
    %40 = arith.maximumf %38, %39 : vector<128x64xf32>
    %c0_30 = arith.constant 0 : index
    %c0_31 = arith.constant 0 : index
    %41 = vector.load %arg8[%c0_30, %c0_31] : memref<64x128xf32, #tpu.memory_space<vmem>>, vector<64x128xf32>
    %cst_32 = arith.constant dense<0.000000e+00> : vector<128x128xf32>
    %42 = tpu.matmul %40, %41, %cst_32 {dimension_numbers = #tpu.dot_dimension_numbers<[1], [0], [0], [1], [0, 0, 1, 1], [], []>} : vector<128x64xf32>, vector<64x128xf32>, vector<128x128xf32> -> vector<128x128xf32>
    %c6 = arith.constant 6 : index
    %c0_33 = arith.constant 0 : index
    %43 = vector.load %arg10[%c6, %c0_33] : memref<8x256xf32, #tpu.memory_space<vmem>>, vector<1x128xf32>
    %44 = vector.broadcast %43 : vector<1x128xf32> to vector<128x128xf32>
    %45 = arith.addf %42, %44 : vector<128x128xf32>
    %cst_34 = arith.constant 0.000000e+00 : f32
    %46 = vector.broadcast %cst_34 : f32 to vector<128x128xf32>
    %47 = arith.maximumf %45, %46 : vector<128x128xf32>
    %c0_35 = arith.constant 0 : index
    %c0_36 = arith.constant 0 : index
    %48 = vector.load %arg9[%c0_35, %c0_36] : memref<128x256xf32, #tpu.memory_space<vmem>>, vector<128x256xf32>
    %cst_37 = arith.constant dense<0.000000e+00> : vector<128x256xf32>
    %49 = tpu.matmul %47, %48, %cst_37 {dimension_numbers = #tpu.dot_dimension_numbers<[1], [0], [0], [1], [0, 0, 1, 1], [], []>} : vector<128x128xf32>, vector<128x256xf32>, vector<128x256xf32> -> vector<128x256xf32>
    %c7 = arith.constant 7 : index
    %c0_38 = arith.constant 0 : index
    %50 = vector.load %arg10[%c7, %c0_38] : memref<8x256xf32, #tpu.memory_space<vmem>>, vector<1x256xf32>
    %51 = vector.broadcast %50 : vector<1x256xf32> to vector<128x256xf32>
    %52 = arith.addf %49, %51 : vector<128x256xf32>
    %53 = arith.negf %52 : vector<128x256xf32>
    %54 = math.exp %53 : vector<128x256xf32>
    %cst_39 = arith.constant 1.000000e+00 : f32
    %55 = vector.broadcast %cst_39 : f32 to vector<128x256xf32>
    %56 = arith.addf %55, %54 : vector<128x256xf32>
    %57 = arith.divf %55, %56 : vector<128x256xf32>
    %c0_40 = arith.constant 0 : index
    %c0_41 = arith.constant 0 : index
    %58 = vector.load %arg11[%c0_40, %c0_41] : memref<128x256xf32, #tpu.memory_space<vmem>>, vector<128x256xf32>
    tpu.vector_store %arg11[%c0_40, %c0_41], %57 {strides = array<i32>} : memref<128x256xf32, #tpu.memory_space<vmem>>, vector<128x256xf32>,
    return
  }
  func.func @transform_0(%arg0: i32) -> (i32, i32) {
    %c0_i32 = arith.constant 0 : i32
    %c0_i32_0 = arith.constant 0 : i32
    return %arg0, %c0_i32 : i32, i32
  }
  func.func @transform_1(%arg0: i32) -> (i32, i32) {
    %c0_i32 = arith.constant 0 : i32
    %c0_i32_0 = arith.constant 0 : i32
    %c0_i32_1 = arith.constant 0 : i32
    return %c0_i32, %c0_i32_0 : i32, i32
  }
  func.func @transform_2(%arg0: i32) -> (i32, i32) {
    %c0_i32 = arith.constant 0 : i32
    %c0_i32_0 = arith.constant 0 : i32
    %c0_i32_1 = arith.constant 0 : i32
    return %c0_i32, %c0_i32_0 : i32, i32
  }
  func.func @transform_3(%arg0: i32) -> (i32, i32) {
    %c0_i32 = arith.constant 0 : i32
    %c0_i32_0 = arith.constant 0 : i32
    %c0_i32_1 = arith.constant 0 : i32
    return %c0_i32, %c0_i32_0 : i32, i32
  }
  func.func @transform_4(%arg0: i32) -> (i32, i32) {
    %c0_i32 = arith.constant 0 : i32
    %c0_i32_0 = arith.constant 0 : i32
    %c0_i32_1 = arith.constant 0 : i32
    return %c0_i32, %c0_i32_0 : i32, i32
  }
  func.func @transform_5(%arg0: i32) -> (i32, i32) {
    %c0_i32 = arith.constant 0 : i32
    %c0_i32_0 = arith.constant 0 : i32
    %c0_i32_1 = arith.constant 0 : i32
    return %c0_i32, %c0_i32_0 : i32, i32
  }
  func.func @transform_6(%arg0: i32) -> (i32, i32) {
    %c0_i32 = arith.constant 0 : i32
    %c0_i32_0 = arith.constant 0 : i32
    %c0_i32_1 = arith.constant 0 : i32
    return %c0_i32, %c0_i32_0 : i32, i32
  }
  func.func @transform_7(%arg0: i32) -> (i32, i32) {
    %c0_i32 = arith.constant 0 : i32
    %c0_i32_0 = arith.constant 0 : i32
    %c0_i32_1 = arith.constant 0 : i32
    return %c0_i32, %c0_i32_0 : i32, i32
  }
  func.func @transform_8(%arg0: i32) -> (i32, i32) {
    %c0_i32 = arith.constant 0 : i32
    %c0_i32_0 = arith.constant 0 : i32
    %c0_i32_1 = arith.constant 0 : i32
    return %c0_i32, %c0_i32_0 : i32, i32
  }
  func.func @transform_9(%arg0: i32) -> (i32, i32) {
    %c0_i32 = arith.constant 0 : i32
    %c0_i32_0 = arith.constant 0 : i32
    %c0_i32_1 = arith.constant 0 : i32
    return %c0_i32, %c0_i32_0 : i32, i32
  }
  func.func @transform_10(%arg0: i32) -> (i32, i32) {
    %c0_i32 = arith.constant 0 : i32
    %c0_i32_0 = arith.constant 0 : i32
    return %arg0, %c0_i32 : i32, i32
  }
}

</mosaic_0001>

<bundles_post_ra>
// kernel: _forward.1
= control target key start
LH: loop header
LB: loop body
LE: loop exit
PB: predicated region body
PF: predicated region fallthrough
CT: control target
= control target key end

     0   :  { %s3996_s0 = inlined_call_operand.hbm [shape: f32[256,256], index: 0, kind: input, shape index: {}]   ;;  %s3997_s1 = inlined_call_operand.vmem [shape: f32[256,128], index: 1, kind: input, shape index: {}]   ;;  %s3998_s2 = inlined_call_operand.vmem [shape: f32[128,64], index: 2, kind: input, shape index: {}]   ;;  %s3999_s3 = inlined_call_operand.vmem [shape: f32[64,32], index: 3, kind: input, shape index: {}]   ;;  %s4000_s4 = inlined_call_operand.vmem [shape: f32[32,16], index: 4, kind: input, shape index: {}]   ;;  %s4001_s5 = inlined_call_operand.vmem [shape: f32[16,32], index: 5, kind: input, shape index: {}]   ;;  %s4002_s6 = inlined_call_operand.hbm [shape: f32[32,64], index: 6, kind: input, shape index: {}]   ;;  %s4003_s7 = inlined_call_operand.vmem [shape: f32[64,128], index: 7, kind: input, shape index: {}]   ;;  %s4004_s8 = inlined_call_operand.hbm [shape: f32[128,256], index: 8, kind: input, shape index: {}]   ;;  %s4005_s9 = inlined_call_operand.hbm [shape: f32[8,256], index: 9, kind: input, shape index: {}]   ;;  %s4006_s10 = inlined_call_operand.hbm [shape: f32[256,256], index: 10, kind: output, shape index: {}]  }
   0x1   :  { %4009 = sst [smem:[#allocation16_spill]] %s4002_s6 }
   0x2   :  { %4010 = sst [smem:[#allocation17_spill]] %s4004_s8 }
   0x3   :  { %4011 = sst [smem:[#allocation18_spill]] %s4005_s9 }
   0x4   :  { %15 = vsyncpa [#allocation3], 0 }
   0x5   :  { %17 = vsyncpa [#allocation3 + $0x1], 0 }
   0x6   :  { %18 = vsyncpa [#allocation6], 0 }
   0x7   :  { %19 = vsyncpa [#allocation9], 0 }
   0x8   :  { %20 = vsyncpa [#allocation4], 0 }
   0x9   :  { %22 = vsyncpa [#allocation4 + $0x1], 0  ;;  %s2964_s13 = smov 0   ;;  %s2966_s14 = smov 0  }
   0xa   :  { %s2968_s15 = smov 0   ;;  %s2970_s16 = smov 0  }
   0xb LB: > { %s2985_s17 = sadd.s32 4294967295, %s2898_s16   ;;  %s2331_s18 = sadd.s32 4294967294, %s2898_s16   ;;  %s2898_s16 = sphi %s2970_s16, %s4061_s16   ;;  %s2894_s15 = sphi %s2968_s15, %s4060_s15   ;;  %s2890_s14 = sphi %s2966_s14, %s4059_s14   ;;  %s2886_s13 = sphi %s2964_s13, %s4058_s13  }
   0xc   : > { %p48_p0 = scmp.ne.s32.totalorder %s2890_s14, %s2886_s13  ;;  %p49_p1 = scmp.eq.s32.totalorder %s2985_s17, 0 }
   0xd   : > { %p261_p2 = scmp.eq.s32.totalorder %s2985_s17, 1  ;;  %p267_p3 = scmp.eq.s32.totalorder %s2331_s18, 1 }
   0xe   : > { %p2994_p4 = por %p49_p1, %p48_p0  ;;  %p2332_p5 = scmp.ge.s32.totalorder %s2898_s16, 1 }
   0xf   : > { %p2999_p6 = por %p267_p3, %p48_p0  ;;  %p274_p7 = scmp.lt.s32.totalorder %s2898_s16, 3 }
  0x10   : > { %s4014_s6 = sld [smem:[#allocation16_spill]]  ;;  %s2900_s25 = smov [#allocation5]  }
  0x11   : > { %p3007_p8 = pnand %p2332_p5, %p274_p7  ;;  %s302_s26 = sshll.u32 %s2900_s25, 4  ;;  %s303_s26 = int_to_ptr.vmem [resolvable:$true] %s302_s26 }
  0x12   : > { %s4017_s8 = sld [smem:[#allocation17_spill]]  ;;  %s2901_s11 = smov 128  }
  0x13   : > { %p2509_p9 = pneg %p3007_p8  ;;  %s2902_s12 = smov 8  }
  0x14   : > { %s2903_s18 = smov [#allocation7]   ;;  %s4007_s22 = smov 256  }
  0x15   : > { %p3015_p10 = pnand %p2509_p9, %p49_p1  ;;  %s319_s21 = sshll.u32 %s2903_s18, 4  ;;  %s320_s21 = int_to_ptr.vmem [resolvable:$true] %s319_s21 }
  0x16   : > { %s300_s23 = sshll.u32 %s4014_s6, 4  ;;  %s4008_s25 = smov 16   ;;  %s301_s23 = int_to_ptr.hbm [resolvable:$true] %s300_s23 }
  0x17   : > { %2512 = dma.hbm_to_vmem [thread:$0]  (!%p3015_p10), %s301_s23, 512, %s303_s26, [#allocation6], %s2901_s11, %s2901_s11, %s2902_s12  }
  0x18   : > { %s317_s30 = sshll.u32 %s4017_s8, 4  ;;  %s4018_s9 = sld [smem:[#allocation18_spill]]  ;;  %s318_s30 = int_to_ptr.hbm [resolvable:$true] %s317_s30 }
  0x19   : > { %2515 = dma.hbm_to_vmem [thread:$0]  (!%p3015_p10), %s318_s30, 4096, %s320_s21, [#allocation6], %s4007_s22, %s4007_s22, %s4008_s25  }
  0x1a   : > { %s2906_s26 = smov [#allocation8]   ;;  %s3036_s12 = sadd.s32 1, %s2898_s16  }
  0x1b   : > { %s334_s11 = sshll.u32 %s2906_s26, 4  ;;  %s32_s18 = ssub.s32 %s2898_s16, %s3036_s12  ;;  %s335_s11 = int_to_ptr.vmem [resolvable:$true] %s334_s11 }
  0x1c   : > { %s35_s6 = sadd.s32 1, %s2894_s15  ;;  %p33_p12 = scmp.eq.s32.totalorder %s32_s18, 0 }
  0x1d   : > { %p42_p13 = scmp.ne.s32.totalorder %s2894_s15, %s2890_s14  ;;  %p43_p0 = scmp.eq.s32.totalorder %s2898_s16, 0 }
  0x1e   : > { %s332_s23 = sshll.u32 %s4018_s9, 4  ;;  %p2530_p5 = scmp.lt.s32.totalorder %s2898_s16, 2  ;;  %s333_s23 = int_to_ptr.hbm [resolvable:$true] %s332_s23 }
  0x1f   : > { %2518 = dma.hbm_to_vmem [thread:$0]  (!%p3015_p10), %s333_s23, 256, %s335_s11, [#allocation9]  }
  0x20   : > { %s3045_s30 = scalar_select %p33_p12, %s2894_s15, %s35_s6  }
  0x21   : > { %p3049_p3 = por %p261_p2, %p42_p13  ;;  %s345_s28 = sand.u32 1, %s2894_s15  }
  0x22   : > { %4019 = sst [smem:[#allocation15_spill]] %s3045_s30  ;;  %s2466_s29 = sshll.u32 %s2898_s16, 8 }
  0x23   : > { %p44_p7 = por %p43_p0, %p42_p13  ;;  %s2337_s27 = sshll.u32 %s345_s28, 8 }
  0x24   : > { %s355_s11 = scalar_lea.hbm %s3996_s0, %s2466_s29  ;;  %s349_s18 = scalar_lea.vmem [#allocation2], %s2337_s27 }
  0x25   : > { %s356_s22 = sshll.u32 %s355_s11, 4  ;;  %s358_s25 = sshll.u32 %s349_s18, 4  ;;  %s357_s22 = int_to_ptr.hbm [resolvable:$true] %s356_s22  ;;  %s359_s25 = int_to_ptr.vmem [resolvable:$true] %s358_s25 }
  0x26   : > { %p3059_p9 = pnand %p2530_p5, %p44_p7  ;;  %s346_s8 = scalar_lea.sflag [#allocation3], %s345_s28 }
  0x27   : > { %s2794_s9 = sshra.s32 %s357_s22, 4  ;;  %s2801_s27 = scalar_lea.hbm %s3996_s0, 512  ;;  %s2795_s9 = int_to_ptr.hbm [resolvable:$true] %s2794_s9 }
  0x28   : > { %s2796_s30 = scalar_lea.hbm %s2795_s9, 256  ;;  %p2798_p10 = pneg %p3059_p9 }
  0x29   : > { %p2797_p2 = scmp.ne.s32.totalorder %s2795_s9, %s2796_s30  ;;  %p2802_p0 = scmp.lt.s32.totalorder %s2795_s9, %s3996_s0 }
  0x2a   : > { %p2803_p5 = scmp.lt.s32.totalorder %s2801_s27, %s2796_s30 }
  0x2b   : > { %p2799_p12 = pnand %p2798_p10, %p2797_p2 }
  0x2c   : > { %p2804_p7 = por %p2803_p5, %p2802_p0 }
  0x2d   : > { %p2800_p13 = pneg %p2799_p12 }
  0x2f   : > { %p2805_p11 = pnand %p2804_p7, %p2800_p13 }
  0x31   : > { %2808 = shalt.err (!%p2805_p11)
}
  0x32   : > { %s4022_s28 = smov 16   ;;  %s4023_s18 = smov 256  }
  0x33   : > { %2522 = dma.hbm_to_vmem [thread:$0]  (!%p3059_p9), %s357_s22, 4096, %s359_s25, %s346_s8, %s4023_s18, %s4023_s18, %s4022_s28  }
  0x34   : > { %370 = sbr.rel (%p3007_p8) target bundleno = 1384 (0x568), region = 60  ;;  %s3079_s29 = sand.u32 (!%p3007_p8), 1, %s2890_s14  }
  0x35   : > { %s2342_s9 = sshll.u32 (!%p3007_p8), %s3079_s29, 8  ;;  %s373_s30 = scalar_lea.sflag (!%p3007_p8), [#allocation3], %s3079_s29 }
  0x36   : > { %s3085_s23 = scalar_lea.vmem (!%p3007_p8), [#allocation2], %s2342_s9 }
  0x39   : > { %2869 = dma.done.wait (%p2994_p4), %s373_s30, 4096  }
  0x3a   : > { %2871 = vsyncadd (%p2994_p4), %s373_s30, 4294963200 }
  0x3b   : > { %2873 = dma.done.wait (%p49_p1), [#allocation6], 4608  }
  0x3c   : > { %2875 = vsyncadd (%p49_p1), [#allocation6], 4294962688 }
  0x3d   : > { %2877 = dma.done.wait (%p49_p1), [#allocation9], 256  }
  0x3e   : > { %2879 = vsyncadd (%p49_p1), [#allocation9], 4294967040  ;;  %v478_v0 = vld [vmem:[%s3997_s1 + $0x78] sm:$0xff]  ;;  %v477_v1 = vld [vmem:[%s3997_s1 + $0x70] sm:$0xff]  ;;  %vm749_vm0 = vcmask 523264   ;;  %vm884_vm1 = vcmask 261120  }
  0x3f   : > { %2469 = vmatpush.msra.mxu1 %v478_v0  ;;  %496 = vmatpush.msra.mxu0 %v478_v0  ;;  %v476_v2 = vld [vmem:[%s3997_s1 + $0x68] sm:$0xff]  ;;  %v475_v3 = vld [vmem:[%s3997_s1 + $0x60] sm:$0xff]  ;;  %v474_v4 = vld [vmem:[%s3997_s1 + $0x58] sm:$0xff]  ;;  %vm1001_vm2 = vcmask 130048   ;;  %s3575_s19 = scalar_lea.vmem [#allocation10], %s2342_s9  ;;  %s2468_s9 = sshll.u32 %s2985_s17, 8 }
  0x40   : > { %v473_v5 = vld [vmem:[%s3997_s1 + $0x50] sm:$0xff]  ;;  %v472_v6 = vld [vmem:[%s3997_s1 + $0x48] sm:$0xff]  ;;  %v471_v7 = vld [vmem:[%s3997_s1 + $0x40] sm:$0xff]  ;;  %s3958_s26 = scalar_lea.hbm %s4006_s10, %s2468_s9  ;;  %s2226_s17 = sshll.u32 %s3575_s19, 4  ;;  %s2227_s17 = int_to_ptr.vmem [resolvable:$true] %s2226_s17 }
  0x41   : > { %2470 = vmatpush.msra.mxu1 %v477_v1  ;;  %497 = vmatpush.msra.mxu0 %v477_v1  ;;  %v470_v8 = vld [vmem:[%s3997_s1 + $0x38] sm:$0xff]  ;;  %v469_v9 = vld [vmem:[%s3997_s1 + $0x30] sm:$0xff]  ;;  %v468_v10 = vld [vmem:[%s3997_s1 + $0x28] sm:$0xff]  ;;  %s2228_s11 = sshll.u32 %s3958_s26, 4  ;;  %s2213_s28 = scalar_lea.sflag [#allocation4], %s3079_s29  ;;  %s2229_s11 = int_to_ptr.hbm [resolvable:$true] %s2228_s11 }
  0x42   : > { %v467_v11 = vld [vmem:[%s3997_s1 + $0x20] sm:$0xff]  ;;  %v466_v12 = vld [vmem:[%s3997_s1 + $0x18] sm:$0xff]  ;;  %v465_v13 = vld [vmem:[%s3997_s1 + $0x10] sm:$0xff]  ;;  %s2838_s18 = sshra.s32 %s2229_s11, 4  ;;  %s2844_s22 = scalar_lea.hbm %s4006_s10, 512  ;;  %s2839_s18 = int_to_ptr.hbm [resolvable:$true] %s2838_s18 }
  0x43   : > { %2471 = vmatpush.msra.mxu1 %v476_v2  ;;  %498 = vmatpush.msra.mxu0 %v476_v2  ;;  %v464_v14 = vld [vmem:[%s3997_s1 + $0x8] sm:$0xff]  ;;  %v463_v15 = vld [vmem:[%s3997_s1] sm:$0xff]  ;;  %v494_v17 = vld [vmem:[%s3997_s1 + $0xf8] sm:$0xff]  ;;  %s2840_s30 = scalar_lea.hbm %s2839_s18, 256  ;;  %p2845_p11 = scmp.lt.s32.totalorder %s2839_s18, %s4006_s10 }
  0x44   : > { %v447_v16 = vld [vmem:[%s3085_s23 + $0x80] sm:$0xff]  ;;  %v493_v18 = vld [vmem:[%s3997_s1 + $0xf0] sm:$0xff]  ;;  %v492_v19 = vld [vmem:[%s3997_s1 + $0xe8] sm:$0xff]  ;;  %p2841_p1 = scmp.ne.s32.totalorder %s2839_s18, %s2840_s30  ;;  %p2846_p9 = scmp.lt.s32.totalorder %s2844_s22, %s2840_s30 }
  0x45   : > { %2472 = vmatpush.msra.mxu1 %v475_v3  ;;  %499 = vmatpush.msra.mxu0 %v475_v3  ;;  %v491_v20 = vld [vmem:[%s3997_s1 + $0xe0] sm:$0xff]  ;;  %v449_v21 = vld [vmem:[%s3085_s23 + $0x90] sm:$0xff]  ;;  %v490_v22 = vld [vmem:[%s3997_s1 + $0xd8] sm:$0xff] }
  0x46   : > { %v489_v23 = vld [vmem:[%s3997_s1 + $0xd0] sm:$0xff]  ;;  %v488_v24 = vld [vmem:[%s3997_s1 + $0xc8] sm:$0xff]  ;;  %v487_v25 = vld [vmem:[%s3997_s1 + $0xc0] sm:$0xff]  ;;  %p2842_p4 = pnand %p2841_p1, %p3049_p3  ;;  %p2847_p2 = por %p2846_p9, %p2845_p11 }
  0x47   : > { %2473 = vmatpush.msra.mxu1 %v474_v4  ;;  %500 = vmatpush.msra.mxu0 %v474_v4  ;;  %v451_v26 = vld [vmem:[%s3085_s23 + $0xa0] sm:$0xff]  ;;  %v486_v27 = vld [vmem:[%s3997_s1 + $0xb8] sm:$0xff]  ;;  %v485_v28 = vld [vmem:[%s3997_s1 + $0xb0] sm:$0xff] }
  0x48   : > { %v484_v29 = vld [vmem:[%s3997_s1 + $0xa8] sm:$0xff]  ;;  %v483_v30 = vld [vmem:[%s3997_s1 + $0xa0] sm:$0xff]  ;;  %v453_v31 = vld [vmem:[%s3085_s23 + $0xb0] sm:$0xff]  ;;  %p2843_p8 = pneg %p2842_p4 }
  0x49   : > { %2474 = vmatpush.msra.mxu1 %v473_v5  ;;  %501 = vmatpush.msra.mxu0 %v473_v5  ;;  %v482_v32 = vld [vmem:[%s3997_s1 + $0x98] sm:$0xff]  ;;  %v481_v33 = vld [vmem:[%s3997_s1 + $0x90] sm:$0xff]  ;;  %v431_v34 = vld [vmem:[%s3085_s23] sm:$0xff] }
  0x4a   : > { %v480_v35 = vld [vmem:[%s3997_s1 + $0x88] sm:$0xff]  ;;  %v479_v36 = vld [vmem:[%s3997_s1 + $0x80] sm:$0xff]  ;;  %v433_v38 = vld [vmem:[%s3085_s23 + $0x10] sm:$0xff]  ;;  %p2848_p10 = pnand %p2847_p2, %p2843_p8 }
  0x4b   : > { %2475 = vmatpush.msra.mxu1 %v472_v6  ;;  %502 = vmatpush.msra.mxu0 %v472_v6  ;;  %v455_v37 = vld [vmem:[%s3085_s23 + $0xc0] sm:$0xff]  ;;  %v457_v39 = vld [vmem:[%s3085_s23 + $0xd0] sm:$0xff]  ;;  %v432_v45 = vld [vmem:[%s3085_s23 + $0x8] sm:$0xff] }
  0x4c   : > { %v435_v40 = vld [vmem:[%s3085_s23 + $0x20] sm:$0xff]  ;;  %v437_v42 = vld [vmem:[%s3085_s23 + $0x30] sm:$0xff]  ;;  %v434_v47 = vld [vmem:[%s3085_s23 + $0x18] sm:$0xff] }
  0x4d   : > { %2476 = vmatpush.msra.mxu1 %v471_v7  ;;  %503 = vmatpush.msra.mxu0 %v471_v7  ;;  %v459_v41 = vld [vmem:[%s3085_s23 + $0xe0] sm:$0xff]  ;;  %v461_v43 = vld [vmem:[%s3085_s23 + $0xf0] sm:$0xff]  ;;  %v436_v49 = vld [vmem:[%s3085_s23 + $0x28] sm:$0xff] }
  0x4e   : > { %v439_v44 = vld [vmem:[%s3085_s23 + $0x40] sm:$0xff]  ;;  %v441_v46 = vld [vmem:[%s3085_s23 + $0x50] sm:$0xff]  ;;  %v438_v51 = vld [vmem:[%s3085_s23 + $0x38] sm:$0xff] }
  0x4f   : > { %2477 = vmatpush.msra.mxu1 %v470_v8  ;;  %504 = vmatpush.msra.mxu0 %v470_v8  ;;  %v443_v48 = vld [vmem:[%s3085_s23 + $0x60] sm:$0xff]  ;;  %v445_v50 = vld [vmem:[%s3085_s23 + $0x70] sm:$0xff]  ;;  %v440_v52 = vld [vmem:[%s3085_s23 + $0x48] sm:$0xff] }
  0x50   : > { %v442_v53 = vld [vmem:[%s3085_s23 + $0x58] sm:$0xff]  ;;  %v444_v54 = vld [vmem:[%s3085_s23 + $0x68] sm:$0xff]  ;;  %v656_v59 = vld [vmem:[%s3998_s2 + $0x70] sm:$0xff] }
  0x51   : > { %2478 = vmatpush.msra.mxu1 %v469_v9  ;;  %505 = vmatpush.msra.mxu0 %v469_v9  ;;  %v446_v55 = vld [vmem:[%s3085_s23 + $0x78] sm:$0xff]  ;;  %v448_v57 = vld [vmem:[%s3085_s23 + $0x88] sm:$0xff]  ;;  %v654_v63 = vld [vmem:[%s3998_s2 + $0x60] sm:$0xff] }
  0x52   : > { %v657_v58 = vld [vmem:[%s3998_s2 + $0x78] sm:$0xff]  ;;  %v655_v62 = vld [vmem:[%s3998_s2 + $0x68] sm:$0xff]  ;;  %v652_v1 = vld [vmem:[%s3998_s2 + $0x50] sm:$0xff] }
  0x53   : > { %2479 = vmatpush.msra.mxu1 %v468_v10  ;;  %506 = vmatpush.msra.mxu0 %v468_v10  ;;  %v450_v61 = vld [vmem:[%s3085_s23 + $0x98] sm:$0xff]  ;;  %v452_v3 = vld [vmem:[%s3085_s23 + $0xa8] sm:$0xff]  ;;  %v650_v5 = vld [vmem:[%s3998_s2 + $0x40] sm:$0xff] }
  0x54   : > { %659 = vmatpush.msra.mxu2 %v657_v58  ;;  %v653_v0 = vld [vmem:[%s3998_s2 + $0x58] sm:$0xff]  ;;  %v651_v4 = vld [vmem:[%s3998_s2 + $0x48] sm:$0xff]  ;;  %v648_v7 = vld [vmem:[%s3998_s2 + $0x30] sm:$0xff] }
  0x55   : > { %2480 = vmatpush.msra.mxu1 %v467_v11  ;;  %507 = vmatpush.msra.mxu0 %v467_v11  ;;  %v649_v6 = vld [vmem:[%s3998_s2 + $0x38] sm:$0xff]  ;;  %v647_v10 = vld [vmem:[%s3998_s2 + $0x28] sm:$0xff]  ;;  %v646_v11 = vld [vmem:[%s3998_s2 + $0x20] sm:$0xff] }
  0x56   : > { %660 = vmatpush.msra.mxu2 %v656_v59  ;;  %v454_v9 = vld [vmem:[%s3085_s23 + $0xb8] sm:$0xff] }
  0x57   : > { %2481 = vmatpush.msra.mxu1 %v466_v12  ;;  %508 = vmatpush.msra.mxu0 %v466_v12  ;;  %v645_v12 = vld [vmem:[%s3998_s2 + $0x18] sm:$0xff] }
  0x58   : > { %661 = vmatpush.msra.mxu2 %v655_v62 }
  0x59   : > { %2482 = vmatpush.msra.mxu1 %v465_v13  ;;  %509 = vmatpush.msra.mxu0 %v465_v13  ;;  %v644_v13 = vld [vmem:[%s3998_s2 + $0x10] sm:$0xff] }
  0x5a   : > { %662 = vmatpush.msra.mxu2 %v654_v63  ;;  %v743_v63 = vld [vmem:[%s3999_s3 + $0x18] sm:$0xff] }
  0x5b   : > { %2483 = vmatpush.msra.mxu1 %v464_v14  ;;  %510 = vmatpush.msra.mxu0 %v464_v14 }
  0x5c   : > { %663 = vmatpush.msra.mxu2 %v653_v0 }
  0x5d   : > { %2484 = vmatpush.msra.mxu1 %v463_v15  ;;  %511 = vmatpush.msra.mxu0 %v463_v15  ;;  %v456_v15 = vld [vmem:[%s3085_s23 + $0xc8] sm:$0xff] }
  0x5e   : > { %536 = vmatmul.f32.vlgmr.msra.gmra.mxu1 %v447_v16  ;;  %512 = vmatmul.f32.vlgmr.msra.gmra.mxu0 %v431_v34  ;;  %v643_v16 = vld [vmem:[%s3998_s2 + $0x8] sm:$0xff] }
  0x5f   : > { %561 = vmatpush.msrb.mxu1 %v494_v17  ;;  %664 = vmatpush.msra.mxu2 %v652_v1  ;;  %v642_v17 = vld [vmem:[%s3998_s2] sm:$0xff] }
  0x61   : > { %562 = vmatpush.msrb.mxu1 %v493_v18  ;;  %665 = vmatpush.msra.mxu2 %v651_v4 }
  0x63   : > { %563 = vmatpush.msrb.mxu1 %v492_v19  ;;  %666 = vmatpush.msra.mxu2 %v650_v5  ;;  %v458_v19 = vld [vmem:[%s3085_s23 + $0xd8] sm:$0xff] }
  0x65   : > { %564 = vmatpush.msrb.mxu1 %v491_v20  ;;  %667 = vmatpush.msra.mxu2 %v649_v6 }
  0x66   : > { %539 = vmatmul.f32.gmra.mxu1 %v449_v21  ;;  %515 = vmatmul.f32.gmra.mxu0 %v433_v38  ;;  %v747_v21 = vld [vmem:[%s3999_s3 + $0x38] sm:$0xff] }
  0x67   : > { %565 = vmatpush.msrb.mxu1 %v490_v22  ;;  %668 = vmatpush.msra.mxu2 %v648_v7 }
  0x68   : > { %2485 = vmatpush.msra.mxu3 %v747_v21 }
  0x69   : > { %566 = vmatpush.msrb.mxu1 %v489_v23  ;;  %669 = vmatpush.msra.mxu2 %v647_v10  ;;  %v460_v23 = vld [vmem:[%s3085_s23 + $0xe8] sm:$0xff]  ;;  %v742_v10 = vld [vmem:[%s3999_s3 + $0x10] sm:$0xff] }
  0x6b   : > { %567 = vmatpush.msrb.mxu1 %v488_v24  ;;  %670 = vmatpush.msra.mxu2 %v646_v11 }
  0x6d   : > { %568 = vmatpush.msrb.mxu1 %v487_v25  ;;  %671 = vmatpush.msra.mxu2 %v645_v12 }
  0x6e   : > { %542 = vmatmul.f32.gmra.mxu1 %v451_v26  ;;  %518 = vmatmul.f32.gmra.mxu0 %v435_v40  ;;  %v462_v26 = vld [vmem:[%s3085_s23 + $0xf8] sm:$0xff]  ;;  %v745_v40 = vld [vmem:[%s3999_s3 + $0x28] sm:$0xff] }
  0x6f   : > { %569 = vmatpush.msrb.mxu1 %v486_v27  ;;  %672 = vmatpush.msra.mxu2 %v644_v13  ;;  %v3294_v27 = vld [vmem:[#allocation8] ss:$0 sm:$0xff] }
  0x71   : > { %570 = vmatpush.msrb.mxu1 %v485_v28  ;;  %673 = vmatpush.msra.mxu2 %v643_v16 }
  0x73   : > { %571 = vmatpush.msrb.mxu1 %v484_v29  ;;  %674 = vmatpush.msra.mxu2 %v642_v17  ;;  %v746_v29 = vld [vmem:[%s3999_s3 + $0x30] sm:$0xff] }
  0x74   : > { %2486 = vmatpush.msra.mxu3 %v746_v29 }
  0x75   : > { %572 = vmatpush.msrb.mxu1 %v483_v30  ;;  %806 = vmatpush.msrb.mxu2 %v747_v21  ;;  %v741_v21 = vld [vmem:[%s3999_s3 + $0x8] sm:$0xff] }
  0x76   : > { %545 = vmatmul.f32.gmra.mxu1 %v453_v31  ;;  %521 = vmatmul.f32.gmra.mxu0 %v437_v42 }
  0x77   : > { %573 = vmatpush.msrb.mxu1 %v482_v32  ;;  %807 = vmatpush.msrb.mxu2 %v746_v29 }
  0x78   : > { %2487 = vmatpush.msra.mxu3 %v745_v40 }
  0x79   : > { %574 = vmatpush.msrb.mxu1 %v481_v33  ;;  %808 = vmatpush.msrb.mxu2 %v745_v40 }
  0x7b   : > { %575 = vmatpush.msrb.mxu1 %v480_v35 }
  0x7d   : > { %576 = vmatpush.msrb.mxu1 %v479_v36 }
  0x7e   : > { %548 = vmatmul.f32.gmra.mxu1 %v455_v37  ;;  %524 = vmatmul.f32.gmra.mxu0 %v439_v44 }
  0x86   : > { %551 = vmatmul.f32.gmra.mxu1 %v457_v39  ;;  %527 = vmatmul.f32.gmra.mxu0 %v441_v46 }
  0x8e   : > { %554 = vmatmul.f32.gmra.mxu1 %v459_v41  ;;  %530 = vmatmul.f32.gmra.mxu0 %v443_v48 }
  0x96   : > { %557 = vmatmul.f32.gmra.mxu1 %v461_v43  ;;  %533 = vmatmul.f32.gmra.mxu0 %v445_v50  ;;  %v744_v50 = vld [vmem:[%s3999_s3 + $0x20] sm:$0xff] }
  0x97   : > { %809 = vmatpush.msrb.mxu2 %v744_v50  ;;  %2488 = vmatpush.msra.mxu3 %v744_v50 }
  0x99   : > { %810 = vmatpush.msrb.mxu2 %v743_v63  ;;  %2489 = vmatpush.msra.mxu3 %v743_v63 }
  0x9b   : > { %811 = vmatpush.msrb.mxu2 %v742_v10  ;;  %2490 = vmatpush.msra.mxu3 %v742_v10 }
  0x9d   : > { %812 = vmatpush.msrb.mxu2 %v741_v21  ;;  %2491 = vmatpush.msra.mxu3 %v741_v21 }
  0x9e   : > { %577 = vmatmul.f32.vlgmr.msrb.gmra.mxu1 %v432_v45 }
  0xa6   : > { %580 = vmatmul.f32.gmra.mxu1 %v434_v47 }
  0xae   : > { %583 = vmatmul.f32.gmra.mxu1 %v436_v49 }
  0xb6   : > { %586 = vmatmul.f32.gmra.mxu1 %v438_v51 }
  0xbe   : > { %589 = vmatmul.f32.gmra.mxu1 %v440_v52 }
  0xc6   : > { %592 = vmatmul.f32.gmra.mxu1 %v442_v53 }
  0xce   : > { %595 = vmatmul.f32.gmra.mxu1 %v444_v54 }
  0xd6   : > { %598 = vmatmul.f32.gmra.mxu1 %v446_v55 }
  0xdb   : > { %v3219_v56 = vpop.f32.mrf.mxu1  ;;  %v513_v20 = vpop.f32.mrf.mxu0 }
  0xdc   : > { %v514_v28 = vadd.f32 %v513_v20, %v3294_v27  ;;  %v538_v11 = vadd.f32 %v3219_v56, %v3294_v27 }
  0xde   : > { %601 = vmatmul.f32.gmra.mxu1 %v448_v57 }
  0xe3   : > { %v3228_v60 = vpop.f32.mrf.mxu1  ;;  %v516_v24 = vpop.f32.mrf.mxu0 }
  0xe4   : > { %v517_v34 = vadd.f32 %v516_v24, %v3294_v27  ;;  %v541_v16 = vadd.f32 %v3228_v60, %v3294_v27 }
  0xe6   : > { %604 = vmatmul.f32.gmra.mxu1 %v450_v61 }
  0xeb   : > { %v3243_v2 = vpop.f32.mrf.mxu1  ;;  %v519_v31 = vpop.f32.mrf.mxu0 }
  0xec   : > { %v520_v39 = vadd.f32 %v519_v31, %v3294_v27  ;;  %v544_v56 = vadd.f32 %v3243_v2, %v3294_v27  ;;  %v740_v31 = vld [vmem:[%s3999_s3] sm:$0xff] }
  0xed   : > { %813 = vmatpush.msrb.mxu2 %v740_v31  ;;  %2492 = vmatpush.msra.mxu3 %v740_v31 }
  0xee   : > { %607 = vmatmul.f32.gmra.mxu1 %v452_v3 }
  0xf3   : > { %v3258_v8 = vpop.f32.mrf.mxu1  ;;  %v522_v37 = vpop.f32.mrf.mxu0 }
  0xf4   : > { %v523_v45 = vadd.f32 %v522_v37, %v3294_v27  ;;  %v547_v60 = vadd.f32 %v3258_v8, %v3294_v27 }
  0xf6   : > { %610 = vmatmul.f32.gmra.mxu1 %v454_v9 }
  0xfb   : > { %v3273_v14 = vpop.f32.mrf.mxu1  ;;  %v525_v44 = vpop.f32.mrf.mxu0 }
  0xfc   : > { %v526_v49 = vadd.f32 %v525_v44, %v3294_v27  ;;  %v550_v2 = vadd.f32 %v3273_v14, %v3294_v27 }
  0xfe   : > { %613 = vmatmul.f32.gmra.mxu1 %v456_v15 }
 0x103   : > { %v3282_v18 = vpop.f32.mrf.mxu1  ;;  %v528_v51 = vpop.f32.mrf.mxu0 }
 0x104   : > { %v529_v55 = vadd.f32 %v528_v51, %v3294_v27  ;;  %v553_v8 = vadd.f32 %v3282_v18, %v3294_v27 }
 0x106   : > { %616 = vmatmul.f32.gmra.mxu1 %v458_v19 }
 0x10b   : > { %v3288_v22 = vpop.f32.mrf.mxu1  ;;  %v531_v58 = vpop.f32.mrf.mxu0 }
 0x10c   : > { %v532_v62 = vadd.f32 %v531_v58, %v3294_v27 }
 0x10e   : > { %619 = vmatmul.f32.gmra.mxu1 %v460_v23 }
 0x113   : > { %v3291_v25 = vpop.f32.mrf.mxu1  ;;  %v534_v3 = vpop.f32.mrf.mxu0 }
 0x114   : > { %v535_v5 = vadd.f32 %v534_v3, %v3294_v27  ;;  %v559_v14 = vadd.f32 %v3291_v25, %v3294_v27  ;;  %v881_v3 = vld [vmem:[%s4000_s4 + $0x10] sm:$0xff] }
 0x116   : > { %622 = vmatmul.f32.gmra.mxu1 %v462_v26 }
 0x11b   : > { %v578_v30 = vpop.f32.mrf.mxu1 }
 0x11c   : > { %v579_v32 = vadd.f32 %v578_v30, %v514_v28 }
 0x11e   : > { %v626_v33 = vmax.f32 %v579_v32, 0.0 }
 0x120   : > { %675 = vmatmul.f32.vlgmr.msra.gmra.mxu2 %v626_v33 }
 0x123   : > { %v581_v35 = vpop.f32.mrf.mxu1 }
 0x124   : > { %v582_v36 = vadd.f32 %v581_v35, %v517_v34 }
 0x126   : > { %v627_v38 = vmax.f32 %v582_v36, 0.0 }
 0x128   : > { %678 = vmatmul.f32.gmra.mxu2 %v627_v38  ;;  %v556_v38 = vadd.f32 %v3288_v22, %v3294_v27 }
 0x12b   : > { %v584_v41 = vpop.f32.mrf.mxu1 }
 0x12c   : > { %v585_v42 = vadd.f32 %v584_v41, %v520_v39 }
 0x12e   : > { %v628_v43 = vmax.f32 %v585_v42, 0.0 }
 0x130   : > { %681 = vmatmul.f32.gmra.mxu2 %v628_v43 }
 0x133   : > { %v587_v46 = vpop.f32.mrf.mxu1 }
 0x134   : > { %v588_v47 = vadd.f32 %v587_v46, %v523_v45  ;;  %v3341_v45 = vld [vmem:[#allocation8 + $0x1] ss:$0 sm:$0xff] }
 0x136   : > { %v629_v48 = vmax.f32 %v588_v47, 0.0 }
 0x138   : > { %684 = vmatmul.f32.gmra.mxu2 %v629_v48 }
 0x13b   : > { %v590_v52 = vpop.f32.mrf.mxu1 }
 0x13c   : > { %v591_v53 = vadd.f32 %v590_v52, %v526_v49 }
 0x13e   : > { %v630_v54 = vmax.f32 %v591_v53, 0.0 }
 0x140   : > { %687 = vmatmul.f32.gmra.mxu2 %v630_v54  ;;  %v882_v54 = vld [vmem:[%s4000_s4 + $0x18] sm:$0xff] }
 0x141   : > { %945 = vmatpush.msrb.mxu3 %v882_v54 }
 0x143   : > { %v593_v57 = vpop.f32.mrf.mxu1  ;;  %946 = vmatpush.msrb.mxu3 %v881_v3 }
 0x144   : > { %v594_v59 = vadd.f32 %v593_v57, %v529_v55 }
 0x146   : > { %v631_v61 = vmax.f32 %v594_v59, 0.0 }
 0x148   : > { %690 = vmatmul.f32.gmra.mxu2 %v631_v61 }
 0x14b   : > { %v596_v0 = vpop.f32.mrf.mxu1 }
 0x14c   : > { %v597_v1 = vadd.f32 %v596_v0, %v532_v62 }
 0x14e   : > { %v632_v4 = vmax.f32 %v597_v1, 0.0 }
 0x150   : > { %693 = vmatmul.f32.gmra.mxu2 %v632_v4 }
 0x153   : > { %v599_v6 = vpop.f32.mrf.mxu1 }
 0x154   : > { %v600_v7 = vadd.f32 %v599_v6, %v535_v5 }
 0x156   : > { %v633_v9 = vmax.f32 %v600_v7, 0.0 }
 0x158   : > { %696 = vmatmul.f32.gmra.mxu2 %v633_v9 }
 0x15b   : > { %v602_v12 = vpop.f32.mrf.mxu1 }
 0x15c   : > { %v603_v13 = vadd.f32 %v602_v12, %v538_v11  ;;  %v880_v11 = vld [vmem:[%s4000_s4 + $0x8] sm:$0xff] }
 0x15d   : > { %947 = vmatpush.msrb.mxu3 %v880_v11 }
 0x15e   : > { %v634_v15 = vmax.f32 %v603_v13, 0.0 }
 0x160   : > { %699 = vmatmul.f32.gmra.mxu2 %v634_v15 }
 0x163   : > { %v605_v17 = vpop.f32.mrf.mxu1 }
 0x164   : > { %v606_v19 = vadd.f32 %v605_v17, %v541_v16 }
 0x166   : > { %v635_v20 = vmax.f32 %v606_v19, 0.0 }
 0x168   : > { %702 = vmatmul.f32.gmra.mxu2 %v635_v20 }
 0x16b   : > { %v608_v23 = vpop.f32.mrf.mxu1 }
 0x16c   : > { %v609_v24 = vadd.f32 %v608_v23, %v544_v56  ;;  %v879_v23 = vld [vmem:[%s4000_s4] sm:$0xff] }
 0x16d   : > { %948 = vmatpush.msrb.mxu3 %v879_v23 }
 0x16e   : > { %v636_v26 = vmax.f32 %v609_v24, 0.0 }
 0x170   : > { %705 = vmatmul.f32.gmra.mxu2 %v636_v26 }
 0x173   : > { %v611_v28 = vpop.f32.mrf.mxu1 }
 0x174   : > { %v612_v29 = vadd.f32 %v611_v28, %v547_v60 }
 0x176   : > { %v637_v30 = vmax.f32 %v612_v29, 0.0 }
 0x178   : > { %708 = vmatmul.f32.gmra.mxu2 %v637_v30 }
 0x17b   : > { %v614_v32 = vpop.f32.mrf.mxu1 }
 0x17c   : > { %v615_v33 = vadd.f32 %v614_v32, %v550_v2 }
 0x17e   : > { %v638_v34 = vmax.f32 %v615_v33, 0.0 }
 0x180   : > { %711 = vmatmul.f32.gmra.mxu2 %v638_v34 }
 0x183   : > { %v617_v35 = vpop.f32.mrf.mxu1 }
 0x184   : > { %v618_v36 = vadd.f32 %v617_v35, %v553_v8  ;;  %v3387_v35 = vld [vmem:[#allocation8 + $0x2] ss:$0 sm:$0xff] }
 0x186   : > { %v639_v37 = vmax.f32 %v618_v36, 0.0 }
 0x188   : > { %714 = vmatmul.f32.gmra.mxu2 %v639_v37 }
 0x18b   : > { %v620_v39 = vpop.f32.mrf.mxu1 }
 0x18c   : > { %v621_v40 = vadd.f32 %v620_v39, %v556_v38 }
 0x18e   : > { %v640_v41 = vmax.f32 %v621_v40, 0.0 }
 0x190   : > { %717 = vmatmul.f32.gmra.mxu2 %v640_v41 }
 0x193   : > { %v623_v42 = vpop.f32.mrf.mxu1 }
 0x194   : > { %v624_v43 = vadd.f32 %v623_v42, %v559_v14 }
 0x196   : > { %v641_v44 = vmax.f32 %v624_v43, 0.0 }
 0x198   : > { %720 = vmatmul.f32.gmra.mxu2 %v641_v44 }
 0x1a3   : > { %v676_v18 = vpop.f32.mrf.mxu2 }
 0x1a4   : > { %v677_v46 = vadd.f32 %v676_v18, %v3341_v45 }
 0x1a6   : > { %v724_v47 = vmax.f32 %v677_v46, 0.0 }
 0x1a8   : > { %2347 = vmatmul.msk.f32.vlgmr.msrb.gmra.mxu2 %vm749_vm0, %v724_v47 }
 0x1ab   : > { %v679_v22 = vpop.f32.mrf.mxu2 }
 0x1ac   : > { %v680_v48 = vadd.f32 %v679_v22, %v3341_v45 }
 0x1ae   : > { %v725_v49 = vmax.f32 %v680_v48, 0.0 }
 0x1b0   : > { %2348 = vmatmul.msk.f32.gmra.mxu2 %vm749_vm0, %v725_v49 }
 0x1b3   : > { %v682_v25 = vpop.f32.mrf.mxu2 }
 0x1b4   : > { %v683_v27 = vadd.f32 %v682_v25, %v3341_v45 }
 0x1b6   : > { %v726_v50 = vmax.f32 %v683_v27, 0.0  ;;  %v999_v27 = vld [vmem:[%s4001_s5 + $0x8] sm:$0xff] }
 0x1b7   : > { %1064 = vmatpush.msrb.mxu0 %v999_v27 }
 0x1b8   : > { %2349 = vmatmul.msk.f32.gmra.mxu2 %vm749_vm0, %v726_v50 }
 0x1bb   : > { %v685_v51 = vpop.f32.mrf.mxu2 }
 0x1bc   : > { %v686_v52 = vadd.f32 %v685_v51, %v3341_v45 }
 0x1be   : > { %v727_v53 = vmax.f32 %v686_v52, 0.0 }
 0x1c0   : > { %2350 = vmatmul.msk.f32.gmra.mxu2 %vm749_vm0, %v727_v53 }
 0x1c3   : > { %v688_v55 = vpop.f32.mrf.mxu2 }
 0x1c4   : > { %v689_v57 = vadd.f32 %v688_v55, %v3341_v45 }
 0x1c6   : > { %v728_v58 = vmax.f32 %v689_v57, 0.0 }
 0x1c8   : > { %2351 = vmatmul.msk.f32.gmra.mxu2 %vm749_vm0, %v728_v58 }
 0x1cb   : > { %v691_v59 = vpop.f32.mrf.mxu2 }
 0x1cc   : > { %v692_v61 = vadd.f32 %v691_v59, %v3341_v45 }
 0x1ce   : > { %v729_v62 = vmax.f32 %v692_v61, 0.0 }
 0x1d0   : > { %2352 = vmatmul.msk.f32.gmra.mxu2 %vm749_vm0, %v729_v62 }
 0x1d3   : > { %v694_v63 = vpop.f32.mrf.mxu2 }
 0x1d4   : > { %v695_v0 = vadd.f32 %v694_v63, %v3341_v45 }
 0x1d6   : > { %v730_v1 = vmax.f32 %v695_v0, 0.0  ;;  %v998_v0 = vld [vmem:[%s4001_s5] sm:$0xff] }
 0x1d7   : > { %1065 = vmatpush.msrb.mxu0 %v998_v0 }
 0x1d8   : > { %2353 = vmatmul.msk.f32.vlgmr.msra.gmra.mxu3 %vm749_vm0, %v730_v1 }
 0x1db   : > { %v697_v4 = vpop.f32.mrf.mxu2 }
 0x1dc   : > { %v698_v5 = vadd.f32 %v697_v4, %v3341_v45 }
 0x1de   : > { %v731_v6 = vmax.f32 %v698_v5, 0.0 }
 0x1e0   : > { %2354 = vmatmul.msk.f32.gmra.mxu3 %vm749_vm0, %v731_v6 }
 0x1e3   : > { %v700_v7 = vpop.f32.mrf.mxu2 }
 0x1e4   : > { %v701_v9 = vadd.f32 %v700_v7, %v3341_v45 }
 0x1e6   : > { %v732_v10 = vmax.f32 %v701_v9, 0.0 }
 0x1e8   : > { %2355 = vmatmul.msk.f32.gmra.mxu3 %vm749_vm0, %v732_v10 }
 0x1eb   : > { %v703_v12 = vpop.f32.mrf.mxu2 }
 0x1ec   : > { %v704_v13 = vadd.f32 %v703_v12, %v3341_v45 }
 0x1ee   : > { %v733_v15 = vmax.f32 %v704_v13, 0.0 }
 0x1f0   : > { %2356 = vmatmul.msk.f32.gmra.mxu3 %vm749_vm0, %v733_v15 }
 0x1f3   : > { %v706_v16 = vpop.f32.mrf.mxu2 }
 0x1f4   : > { %v707_v17 = vadd.f32 %v706_v16, %v3341_v45  ;;  %v1134_v16 = vld [vmem:[#allocation5 + $0x18] sm:$0xff] }
 0x1f5   : > { %1196 = vmatpush.msra.mxu1 %v1134_v16 }
 0x1f6   : > { %v734_v19 = vmax.f32 %v707_v17, 0.0 }
 0x1f8   : > { %2357 = vmatmul.msk.f32.gmra.mxu3 %vm749_vm0, %v734_v19 }
 0x1fb   : > { %v709_v20 = vpop.f32.mrf.mxu2 }
 0x1fc   : > { %v710_v21 = vadd.f32 %v709_v20, %v3341_v45 }
 0x1fe   : > { %v735_v56 = vmax.f32 %v710_v21, 0.0 }
 0x200   : > { %2358 = vmatmul.msk.f32.gmra.mxu3 %vm749_vm0, %v735_v56 }
 0x203   : > { %v712_v24 = vpop.f32.mrf.mxu2 }
 0x204   : > { %v713_v26 = vadd.f32 %v712_v24, %v3341_v45  ;;  %v883_v24 = vld [vmem:[#allocation8 + $0x3] ss:$0 sm:$0xff] }
 0x206   : > { %v736_v60 = vmax.f32 %v713_v26, 0.0 }
 0x208   : > { %2359 = vmatmul.msk.f32.gmra.mxu3 %vm749_vm0, %v736_v60 }
 0x20b   : > { %v715_v28 = vpop.f32.mrf.mxu2 }
 0x20c   : > { %v716_v29 = vadd.f32 %v715_v28, %v3341_v45  ;;  %v1133_v28 = vld [vmem:[#allocation5 + $0x10] sm:$0xff] }
 0x20d   : > { %1197 = vmatpush.msra.mxu1 %v1133_v28 }
 0x20e   : > { %v737_v30 = vmax.f32 %v716_v29, 0.0 }
 0x210   : > { %2360 = vmatmul.msk.f32.gmra.mxu3 %vm749_vm0, %v737_v30 }
 0x213   : > { %v718_v31 = vpop.f32.mrf.mxu2 }
 0x214   : > { %v719_v2 = vadd.f32 %v718_v31, %v3341_v45 }
 0x216   : > { %v738_v32 = vmax.f32 %v719_v2, 0.0 }
 0x218   : > { %2361 = vmatmul.msk.f32.gmra.mxu3 %vm749_vm0, %v738_v32 }
 0x21b   : > { %v721_v33 = vpop.f32.mrf.mxu2 }
 0x21c   : > { %v722_v34 = vadd.f32 %v721_v33, %v3341_v45 }
 0x21e   : > { %v739_v8 = vmax.f32 %v722_v34, 0.0 }
 0x220   : > { %2362 = vmatmul.msk.f32.gmra.mxu3 %vm749_vm0, %v739_v8 }
 0x22b   : > { %v815_v36 = vpop.f32.mrf.mxu2 }
 0x22c   : > { %v816_v37 = vadd.f32 %v815_v36, %v3387_v35 }
 0x22e   : > { %v863_v38 = vmax.f32 %v816_v37, 0.0 }
 0x230   : > { %2363 = vmatmul.msk.f32.vlgmr.msrb.gmra.mxu3 %vm884_vm1, %v863_v38 }
 0x233   : > { %v818_v39 = vpop.f32.mrf.mxu2 }
 0x234   : > { %v819_v40 = vadd.f32 %v818_v39, %v3387_v35 }
 0x236   : > { %v864_v41 = vmax.f32 %v819_v40, 0.0 }
 0x238   : > { %2364 = vmatmul.msk.f32.gmra.mxu3 %vm884_vm1, %v864_v41 }
 0x23b   : > { %v821_v14 = vpop.f32.mrf.mxu2 }
 0x23c   : > { %v822_v42 = vadd.f32 %v821_v14, %v3387_v35 }
 0x23e   : > { %v865_v43 = vmax.f32 %v822_v42, 0.0 }
 0x240   : > { %2365 = vmatmul.msk.f32.gmra.mxu3 %vm884_vm1, %v865_v43  ;;  %v1131_v43 = vld [vmem:[#allocation5] sm:$0xff] }
 0x243   : > { %v824_v44 = vpop.f32.mrf.mxu2 }
 0x244   : > { %v825_v45 = vadd.f32 %v824_v44, %v3387_v35 }
 0x246   : > { %v866_v18 = vmax.f32 %v825_v45, 0.0 }
 0x248   : > { %2366 = vmatmul.msk.f32.gmra.mxu3 %vm884_vm1, %v866_v18 }
 0x24b   : > { %v827_v46 = vpop.f32.mrf.mxu2 }
 0x24c   : > { %v828_v47 = vadd.f32 %v827_v46, %v3387_v35 }
 0x24e   : > { %v867_v22 = vmax.f32 %v828_v47, 0.0 }
 0x250   : > { %2367 = vmatmul.msk.f32.gmra.mxu3 %vm884_vm1, %v867_v22 }
 0x253   : > { %v830_v48 = vpop.f32.mrf.mxu2 }
 0x254   : > { %v831_v49 = vadd.f32 %v830_v48, %v3387_v35 }
 0x256   : > { %v868_v25 = vmax.f32 %v831_v49, 0.0 }
 0x258   : > { %2368 = vmatmul.msk.f32.gmra.mxu3 %vm884_vm1, %v868_v25 }
 0x25b   : > { %v833_v50 = vpop.f32.mrf.mxu3 }
 0x25c   : > { %v834_v51 = vadd.f32 %v833_v50, %v3387_v35 }
 0x25e   : > { %v869_v52 = vmax.f32 %v834_v51, 0.0 }
 0x260   : > { %2369 = vmatmul.msk.f32.gmra.mxu3 %vm884_vm1, %v869_v52 }
 0x263   : > { %v836_v53 = vpop.f32.mrf.mxu3 }
 0x264   : > { %v837_v54 = vadd.f32 %v836_v53, %v3387_v35 }
 0x266   : > { %v870_v55 = vmax.f32 %v837_v54, 0.0  ;;  %v3443_v54 = vld [vmem:[#allocation8 + $0x4] ss:$0 sm:$0xff] }
 0x268   : > { %2370 = vmatmul.msk.f32.gmra.mxu3 %vm884_vm1, %v870_v55 }
 0x26b   : > { %v839_v57 = vpop.f32.mrf.mxu3 }
 0x26c   : > { %v840_v58 = vadd.f32 %v839_v57, %v3387_v35 }
 0x26e   : > { %v871_v59 = vmax.f32 %v840_v58, 0.0 }
 0x270   : > { %2371 = vmatmul.msk.f32.gmra.mxu3 %vm884_vm1, %v871_v59 }
 0x273   : > { %v842_v61 = vpop.f32.mrf.mxu3 }
 0x274   : > { %v843_v62 = vadd.f32 %v842_v61, %v3387_v35 }
 0x276   : > { %v872_v63 = vmax.f32 %v843_v62, 0.0 }
 0x278   : > { %2372 = vmatmul.msk.f32.gmra.mxu3 %vm884_vm1, %v872_v63 }
 0x27b   : > { %v845_v1 = vpop.f32.mrf.mxu3 }
 0x27c   : > { %v846_v3 = vadd.f32 %v845_v1, %v3387_v35 }
 0x27e   : > { %v873_v4 = vmax.f32 %v846_v3, 0.0 }
 0x280   : > { %2373 = vmatmul.msk.f32.gmra.mxu3 %vm884_vm1, %v873_v4 }
 0x283   : > { %v848_v5 = vpop.f32.mrf.mxu3 }
 0x284   : > { %v849_v6 = vadd.f32 %v848_v5, %v3387_v35 }
 0x286   : > { %v874_v7 = vmax.f32 %v849_v6, 0.0 }
 0x288   : > { %2374 = vmatmul.msk.f32.gmra.mxu3 %vm884_vm1, %v874_v7 }
 0x28b   : > { %v851_v9 = vpop.f32.mrf.mxu3 }
 0x28c   : > { %v852_v10 = vadd.f32 %v851_v9, %v3387_v35 }
 0x28e   : > { %v875_v11 = vmax.f32 %v852_v10, 0.0 }
 0x290   : > { %2375 = vmatmul.msk.f32.gmra.mxu3 %vm884_vm1, %v875_v11 }
 0x293   : > { %v854_v12 = vpop.f32.mrf.mxu3 }
 0x294   : > { %v855_v13 = vadd.f32 %v854_v12, %v3387_v35 }
 0x296   : > { %v876_v15 = vmax.f32 %v855_v13, 0.0 }
 0x298   : > { %2376 = vmatmul.msk.f32.gmra.mxu3 %vm884_vm1, %v876_v15 }
 0x29b   : > { %v857_v17 = vpop.f32.mrf.mxu3 }
 0x29c   : > { %v858_v19 = vadd.f32 %v857_v17, %v3387_v35  ;;  %v1272_v17 = vld [vmem:[%s4003_s7 + $0x38] sm:$0xff] }
 0x29d   : > { %1330 = vmatpush.msra.mxu2 %v1272_v17  ;;  %v1422_v17 = vld [vmem:[#allocation7 + $0x98] sm:$0xff] }
 0x29e   : > { %v877_v20 = vmax.f32 %v858_v19, 0.0 }
 0x2a0   : > { %2377 = vmatmul.msk.f32.gmra.mxu3 %vm884_vm1, %v877_v20 }
 0x2a3   : > { %v860_v21 = vpop.f32.mrf.mxu3 }
 0x2a4   : > { %v861_v56 = vadd.f32 %v860_v21, %v3387_v35  ;;  %v1132_v35 = vld [vmem:[#allocation5 + $0x8] sm:$0xff] }
 0x2a5   : > { %1198 = vmatpush.msra.mxu1 %v1132_v35 }
 0x2a6   : > { %v878_v23 = vmax.f32 %v861_v56, 0.0  ;;  %v1271_v56 = vld [vmem:[%s4003_s7 + $0x30] sm:$0xff] }
 0x2a7   : > { %1199 = vmatpush.msra.mxu1 %v1131_v43  ;;  %1331 = vmatpush.msra.mxu2 %v1271_v56 }
 0x2a8   : > { %2378 = vmatmul.msk.f32.gmra.mxu3 %vm884_vm1, %v878_v23 }
 0x2b3   : > { %v950_v26 = vpop.f32.mrf.mxu3 }
 0x2b4   : > { %v951_v60 = vadd.f32 %v950_v26, %v883_v24 }
 0x2b6   : > { %2379 = vmatmul.msk.f32.vlgmr.msrb.gmra.mxu0 %vm1001_vm2, %v951_v60  ;;  %v1270_v60 = vld [vmem:[%s4003_s7 + $0x28] sm:$0xff] }
 0x2b7   : > { %1332 = vmatpush.msra.mxu2 %v1270_v60 }
 0x2bb   : > { %v953_v29 = vpop.f32.mrf.mxu3 }
 0x2bc   : > { %v954_v30 = vadd.f32 %v953_v29, %v883_v24 }
 0x2be   : > { %2380 = vmatmul.msk.f32.gmra.mxu0 %vm1001_vm2, %v954_v30 }
 0x2c3   : > { %v956_v31 = vpop.f32.mrf.mxu3 }
 0x2c4   : > { %v957_v2 = vadd.f32 %v956_v31, %v883_v24  ;;  %v1269_v31 = vld [vmem:[%s4003_s7 + $0x20] sm:$0xff] }
 0x2c5   : > { %1333 = vmatpush.msra.mxu2 %v1269_v31 }
 0x2c6   : > { %2381 = vmatmul.msk.f32.gmra.mxu0 %vm1001_vm2, %v957_v2  ;;  %v1268_v2 = vld [vmem:[%s4003_s7 + $0x18] sm:$0xff] }
 0x2c7   : > { %1334 = vmatpush.msra.mxu2 %v1268_v2 }
 0x2cb   : > { %v959_v32 = vpop.f32.mrf.mxu3 }
 0x2cc   : > { %v960_v33 = vadd.f32 %v959_v32, %v883_v24 }
 0x2ce   : > { %2382 = vmatmul.msk.f32.gmra.mxu0 %vm1001_vm2, %v960_v33 }
 0x2d3   : > { %v962_v34 = vpop.f32.mrf.mxu3 }
 0x2d4   : > { %v963_v8 = vadd.f32 %v962_v34, %v883_v24 }
 0x2d6   : > { %2383 = vmatmul.msk.f32.gmra.mxu0 %vm1001_vm2, %v963_v8  ;;  %v1267_v8 = vld [vmem:[%s4003_s7 + $0x10] sm:$0xff] }
 0x2d7   : > { %1335 = vmatpush.msra.mxu2 %v1267_v8 }
 0x2db   : > { %v965_v36 = vpop.f32.mrf.mxu3 }
 0x2dc   : > { %v966_v37 = vadd.f32 %v965_v36, %v883_v24 }
 0x2de   : > { %2384 = vmatmul.msk.f32.gmra.mxu0 %vm1001_vm2, %v966_v37 }
 0x2e3   : > { %v968_v38 = vpop.f32.mrf.mxu3 }
 0x2e4   : > { %v969_v39 = vadd.f32 %v968_v38, %v883_v24  ;;  %v1266_v38 = vld [vmem:[%s4003_s7 + $0x8] sm:$0xff] }
 0x2e5   : > { %1336 = vmatpush.msra.mxu2 %v1266_v38  ;;  %v1411_v38 = vld [vmem:[#allocation7 + $0x40] sm:$0xff] }
 0x2e6   : > { %2385 = vmatmul.msk.f32.gmra.mxu0 %vm1001_vm2, %v969_v39  ;;  %v1265_v39 = vld [vmem:[%s4003_s7] sm:$0xff] }
 0x2e7   : > { %1337 = vmatpush.msra.mxu2 %v1265_v39 }
 0x2eb   : > { %v971_v40 = vpop.f32.mrf.mxu3 }
 0x2ec   : > { %v972_v41 = vadd.f32 %v971_v40, %v883_v24 }
 0x2ee   : > { %2386 = vmatmul.msk.f32.gmra.mxu0 %vm1001_vm2, %v972_v41 }
 0x2f3   : > { %v974_v14 = vpop.f32.mrf.mxu3 }
 0x2f4   : > { %v975_v42 = vadd.f32 %v974_v14, %v883_v24 }
 0x2f6   : > { %2387 = vmatmul.msk.f32.gmra.mxu0 %vm1001_vm2, %v975_v42 }
 0x2fb   : > { %v977_v44 = vpop.f32.mrf.mxu3 }
 0x2fc   : > { %v978_v45 = vadd.f32 %v977_v44, %v883_v24 }
 0x2fe   : > { %2388 = vmatmul.msk.f32.gmra.mxu0 %vm1001_vm2, %v978_v45  ;;  %v1433_v45 = vld [vmem:[#allocation7 + $0xf0] sm:$0xff] }
 0x2ff   : > { %1442 = vmatpush.msra.mxu3 %v1433_v45 }
 0x303   : > { %v980_v18 = vpop.f32.mrf.mxu3 }
 0x304   : > { %v981_v46 = vadd.f32 %v980_v18, %v883_v24 }
 0x306   : > { %2389 = vmatmul.msk.f32.gmra.mxu0 %vm1001_vm2, %v981_v46 }
 0x30b   : > { %v983_v47 = vpop.f32.mrf.mxu3 }
 0x30c   : > { %v984_v22 = vadd.f32 %v983_v47, %v883_v24 }
 0x30e   : > { %2390 = vmatmul.msk.f32.gmra.mxu0 %vm1001_vm2, %v984_v22  ;;  %v1434_v22 = vld [vmem:[#allocation7 + $0xf8] sm:$0xff] }
 0x30f   : > { %1507 = vmatpush.msra.mxu0 %v1434_v22 }
 0x313   : > { %v986_v48 = vpop.f32.mrf.mxu3 }
 0x314   : > { %v987_v49 = vadd.f32 %v986_v48, %v883_v24  ;;  %v1431_v48 = vld [vmem:[#allocation7 + $0xe0] sm:$0xff] }
 0x315   : > { %1443 = vmatpush.msra.mxu3 %v1431_v48 }
 0x316   : > { %2391 = vmatmul.msk.f32.gmra.mxu0 %vm1001_vm2, %v987_v49 }
 0x31b   : > { %v989_v25 = vpop.f32.mrf.mxu3 }
 0x31c   : > { %v990_v27 = vadd.f32 %v989_v25, %v883_v24 }
 0x31e   : > { %2392 = vmatmul.msk.f32.gmra.mxu0 %vm1001_vm2, %v990_v27 }
 0x323   : > { %v992_v50 = vpop.f32.mrf.mxu3 }
 0x324   : > { %v993_v51 = vadd.f32 %v992_v50, %v883_v24  ;;  %v1432_v50 = vld [vmem:[#allocation7 + $0xe8] sm:$0xff] }
 0x325   : > { %1508 = vmatpush.msra.mxu0 %v1432_v50  ;;  %v1403_v50 = vld [vmem:[#allocation7] sm:$0xff] }
 0x326   : > { %2393 = vmatmul.msk.f32.gmra.mxu0 %vm1001_vm2, %v993_v51  ;;  %v1429_v51 = vld [vmem:[#allocation7 + $0xd0] sm:$0xff] }
 0x327   : > { %1444 = vmatpush.msra.mxu3 %v1429_v51 }
 0x32b   : > { %v995_v52 = vpop.f32.mrf.mxu3 }
 0x32c   : > { %v996_v53 = vadd.f32 %v995_v52, %v883_v24  ;;  %v3501_v52 = vld [vmem:[#allocation8 + $0x5] ss:$0 sm:$0xff] }
 0x32e   : > { %2394 = vmatmul.msk.f32.gmra.mxu0 %vm1001_vm2, %v996_v53 }
 0x333   : > { %v1067_v55 = vpop.f32.mrf.mxu0 }
 0x334   : > { %v1068_v57 = vadd.f32 %v1067_v55, %v3443_v54 }
 0x336   : > { %v1115_v58 = vmax.f32 %v1068_v57, 0.0 }
 0x338   : > { %2395 = vmatmul.msk.f32.vlgmr.msra.gmra.mxu1 %vm884_vm1, %v1115_v58  ;;  %v1430_v58 = vld [vmem:[#allocation7 + $0xd8] sm:$0xff] }
 0x339   : > { %1509 = vmatpush.msra.mxu0 %v1430_v58 }
 0x33b   : > { %v1070_v59 = vpop.f32.mrf.mxu0 }
 0x33c   : > { %v1071_v61 = vadd.f32 %v1070_v59, %v3443_v54  ;;  %v1427_v59 = vld [vmem:[#allocation7 + $0xc0] sm:$0xff] }
 0x33d   : > { %1445 = vmatpush.msra.mxu3 %v1427_v59 }
 0x33e   : > { %v1116_v62 = vmax.f32 %v1071_v61, 0.0 }
 0x340   : > { %2396 = vmatmul.msk.f32.gmra.mxu1 %vm884_vm1, %v1116_v62 }
 0x343   : > { %v1073_v63 = vpop.f32.mrf.mxu0 }
 0x344   : > { %v1074_v0 = vadd.f32 %v1073_v63, %v3443_v54  ;;  %v1428_v63 = vld [vmem:[#allocation7 + $0xc8] sm:$0xff] }
 0x345   : > { %1510 = vmatpush.msra.mxu0 %v1428_v63 }
 0x346   : > { %v1117_v1 = vmax.f32 %v1074_v0, 0.0  ;;  %v1425_v0 = vld [vmem:[#allocation7 + $0xb0] sm:$0xff] }
 0x347   : > { %1446 = vmatpush.msra.mxu3 %v1425_v0 }
 0x348   : > { %2397 = vmatmul.msk.f32.gmra.mxu1 %vm884_vm1, %v1117_v1 }
 0x34b   : > { %v1076_v3 = vpop.f32.mrf.mxu0 }
 0x34c   : > { %v1077_v4 = vadd.f32 %v1076_v3, %v3443_v54 }
 0x34e   : > { %v1118_v5 = vmax.f32 %v1077_v4, 0.0 }
 0x350   : > { %2398 = vmatmul.msk.f32.gmra.mxu1 %vm884_vm1, %v1118_v5  ;;  %v1426_v5 = vld [vmem:[#allocation7 + $0xb8] sm:$0xff] }
 0x351   : > { %1511 = vmatpush.msra.mxu0 %v1426_v5 }
 0x353   : > { %v1079_v6 = vpop.f32.mrf.mxu0 }
 0x354   : > { %v1080_v7 = vadd.f32 %v1079_v6, %v3443_v54  ;;  %v1423_v6 = vld [vmem:[#allocation7 + $0xa0] sm:$0xff] }
 0x355   : > { %1447 = vmatpush.msra.mxu3 %v1423_v6 }
 0x356   : > { %v1119_v9 = vmax.f32 %v1080_v7, 0.0 }
 0x358   : > { %2399 = vmatmul.msk.f32.gmra.mxu1 %vm884_vm1, %v1119_v9 }
 0x35b   : > { %v1082_v10 = vpop.f32.mrf.mxu0 }
 0x35c   : > { %v1083_v11 = vadd.f32 %v1082_v10, %v3443_v54 }
 0x35e   : > { %v1120_v12 = vmax.f32 %v1083_v11, 0.0  ;;  %v1424_v11 = vld [vmem:[#allocation7 + $0xa8] sm:$0xff] }
 0x35f   : > { %1512 = vmatpush.msra.mxu0 %v1424_v11 }
 0x360   : > { %2400 = vmatmul.msk.f32.gmra.mxu1 %vm884_vm1, %v1120_v12  ;;  %v1421_v12 = vld [vmem:[#allocation7 + $0x90] sm:$0xff] }
 0x361   : > { %1448 = vmatpush.msra.mxu3 %v1421_v12  ;;  %1513 = vmatpush.msra.mxu0 %v1422_v17 }
 0x363   : > { %v1085_v13 = vpop.f32.mrf.mxu0 }
 0x364   : > { %v1086_v15 = vadd.f32 %v1085_v13, %v3443_v54 }
 0x366   : > { %v1121_v16 = vmax.f32 %v1086_v15, 0.0 }
 0x368   : > { %2401 = vmatmul.msk.f32.gmra.mxu1 %vm884_vm1, %v1121_v16 }
 0x36b   : > { %v1088_v19 = vpop.f32.mrf.mxu0 }
 0x36c   : > { %v1089_v20 = vadd.f32 %v1088_v19, %v3443_v54  ;;  %v1419_v19 = vld [vmem:[#allocation7 + $0x80] sm:$0xff] }
 0x36d   : > { %1449 = vmatpush.msra.mxu3 %v1419_v19 }
 0x36e   : > { %v1122_v21 = vmax.f32 %v1089_v20, 0.0 }
 0x370   : > { %2402 = vmatmul.msk.f32.gmra.mxu1 %vm884_vm1, %v1122_v21 }
 0x373   : > { %v1091_v23 = vpop.f32.mrf.mxu0 }
 0x374   : > { %v1092_v24 = vadd.f32 %v1091_v23, %v3443_v54  ;;  %v1420_v23 = vld [vmem:[#allocation7 + $0x88] sm:$0xff] }
 0x375   : > { %1514 = vmatpush.msra.mxu0 %v1420_v23 }
 0x376   : > { %v1123_v26 = vmax.f32 %v1092_v24, 0.0  ;;  %v1417_v24 = vld [vmem:[#allocation7 + $0x70] sm:$0xff] }
 0x377   : > { %1450 = vmatpush.msra.mxu3 %v1417_v24 }
 0x378   : > { %2403 = vmatmul.msk.f32.gmra.mxu1 %vm884_vm1, %v1123_v26 }
 0x37b   : > { %v1094_v28 = vpop.f32.mrf.mxu0 }
 0x37c   : > { %v1095_v29 = vadd.f32 %v1094_v28, %v3443_v54 }
 0x37e   : > { %v1124_v30 = vmax.f32 %v1095_v29, 0.0  ;;  %v1418_v29 = vld [vmem:[#allocation7 + $0x78] sm:$0xff] }
 0x37f   : > { %1515 = vmatpush.msra.mxu0 %v1418_v29 }
 0x380   : > { %2404 = vmatmul.msk.f32.gmra.mxu1 %vm884_vm1, %v1124_v30  ;;  %v1415_v30 = vld [vmem:[#allocation7 + $0x60] sm:$0xff] }
 0x381   : > { %1451 = vmatpush.msra.mxu3 %v1415_v30 }
 0x383   : > { %v1097_v32 = vpop.f32.mrf.mxu0 }
 0x384   : > { %v1098_v33 = vadd.f32 %v1097_v32, %v3443_v54 }
 0x386   : > { %v1125_v34 = vmax.f32 %v1098_v33, 0.0  ;;  %v1416_v33 = vld [vmem:[#allocation7 + $0x68] sm:$0xff] }
 0x387   : > { %1516 = vmatpush.msra.mxu0 %v1416_v33 }
 0x388   : > { %2405 = vmatmul.msk.f32.gmra.mxu1 %vm884_vm1, %v1125_v34  ;;  %v1413_v34 = vld [vmem:[#allocation7 + $0x50] sm:$0xff] }
 0x389   : > { %1452 = vmatpush.msra.mxu3 %v1413_v34 }
 0x38b   : > { %v1100_v35 = vpop.f32.mrf.mxu0  ;;  %1453 = vmatpush.msra.mxu3 %v1411_v38 }
 0x38c   : > { %v1101_v36 = vadd.f32 %v1100_v35, %v3443_v54 }
 0x38e   : > { %v1126_v37 = vmax.f32 %v1101_v36, 0.0 }
 0x390   : > { %2406 = vmatmul.msk.f32.gmra.mxu1 %vm884_vm1, %v1126_v37  ;;  %v1414_v37 = vld [vmem:[#allocation7 + $0x58] sm:$0xff] }
 0x391   : > { %1517 = vmatpush.msra.mxu0 %v1414_v37 }
 0x393   : > { %v1103_v40 = vpop.f32.mrf.mxu0 }
 0x394   : > { %v1104_v41 = vadd.f32 %v1103_v40, %v3443_v54 }
 0x396   : > { %v1127_v14 = vmax.f32 %v1104_v41, 0.0 }
 0x398   : > { %2407 = vmatmul.msk.f32.gmra.mxu1 %vm884_vm1, %v1127_v14  ;;  %v1412_v14 = vld [vmem:[#allocation7 + $0x48] sm:$0xff] }
 0x399   : > { %1518 = vmatpush.msra.mxu0 %v1412_v14 }
 0x39b   : > { %v1106_v42 = vpop.f32.mrf.mxu0 }
 0x39c   : > { %v1107_v43 = vadd.f32 %v1106_v42, %v3443_v54  ;;  %v1409_v42 = vld [vmem:[#allocation7 + $0x30] sm:$0xff] }
 0x39d   : > { %1454 = vmatpush.msra.mxu3 %v1409_v42 }
 0x39e   : > { %v1128_v44 = vmax.f32 %v1107_v43, 0.0 }
 0x3a0   : > { %2408 = vmatmul.msk.f32.gmra.mxu1 %vm884_vm1, %v1128_v44 }
 0x3a3   : > { %v1109_v18 = vpop.f32.mrf.mxu0 }
 0x3a4   : > { %v1110_v46 = vadd.f32 %v1109_v18, %v3443_v54  ;;  %v1410_v18 = vld [vmem:[#allocation7 + $0x38] sm:$0xff] }
 0x3a5   : > { %1519 = vmatpush.msra.mxu0 %v1410_v18 }
 0x3a6   : > { %v1129_v47 = vmax.f32 %v1110_v46, 0.0  ;;  %v1407_v46 = vld [vmem:[#allocation7 + $0x20] sm:$0xff] }
 0x3a7   : > { %1455 = vmatpush.msra.mxu3 %v1407_v46 }
 0x3a8   : > { %2409 = vmatmul.msk.f32.gmra.mxu1 %vm884_vm1, %v1129_v47 }
 0x3ab   : > { %v1112_v49 = vpop.f32.mrf.mxu0 }
 0x3ac   : > { %v1113_v25 = vadd.f32 %v1112_v49, %v3443_v54  ;;  %v1408_v49 = vld [vmem:[#allocation7 + $0x28] sm:$0xff] }
 0x3ad   : > { %1520 = vmatpush.msra.mxu0 %v1408_v49 }
 0x3ae   : > { %v1130_v27 = vmax.f32 %v1113_v25, 0.0  ;;  %v1405_v25 = vld [vmem:[#allocation7 + $0x10] sm:$0xff] }
 0x3af   : > { %1456 = vmatpush.msra.mxu3 %v1405_v25 }
 0x3b0   : > { %2410 = vmatmul.msk.f32.gmra.mxu1 %vm884_vm1, %v1130_v27  ;;  %v1406_v27 = vld [vmem:[#allocation7 + $0x18] sm:$0xff] }
 0x3b1   : > { %1521 = vmatpush.msra.mxu0 %v1406_v27  ;;  %1457 = vmatpush.msra.mxu3 %v1403_v50  ;;  %v1436_v27 = vld [vmem:[#allocation8 + $0x7] ss:$8 sm:$0x3] }
 0x3b2   : > { %v3553_v50 = vperm.slane %v1436_v27, 1 }
 0x3b5   : > { %v1201_v53 = vpop.f32.mrf.mxu1 }
 0x3b6   : > { %v1202_v55 = vadd.f32 %v1201_v53, %v3501_v52 }
 0x3b8   : > { %v1249_v57 = vmax.f32 %v1202_v55, 0.0 }
 0x3ba   : > { %2411 = vmatmul.msk.f32.vlgmr.msra.gmra.mxu2 %vm749_vm0, %v1249_v57 }
 0x3bd   : > { %v1204_v54 = vpop.f32.mrf.mxu1 }
 0x3be   : > { %v1205_v61 = vadd.f32 %v1204_v54, %v3501_v52  ;;  %v1404_v54 = vld [vmem:[#allocation7 + $0x8] sm:$0xff] }
 0x3bf   : > { %1522 = vmatpush.msra.mxu0 %v1404_v54 }
 0x3c0   : > { %v1250_v62 = vmax.f32 %v1205_v61, 0.0 }
 0x3c2   : > { %2412 = vmatmul.msk.f32.gmra.mxu2 %vm749_vm0, %v1250_v62 }
 0x3c5   : > { %v1207_v1 = vpop.f32.mrf.mxu1 }
 0x3c6   : > { %v1208_v3 = vadd.f32 %v1207_v1, %v3501_v52 }
 0x3c8   : > { %v1251_v4 = vmax.f32 %v1208_v3, 0.0 }
 0x3ca   : > { %2413 = vmatmul.msk.f32.gmra.mxu2 %vm749_vm0, %v1251_v4  ;;  %v3535_v4 = vld [vmem:[#allocation8 + $0x6] ss:$0 sm:$0xff] }
 0x3cd   : > { %v1210_v7 = vpop.f32.mrf.mxu1 }
 0x3ce   : > { %v1211_v9 = vadd.f32 %v1210_v7, %v3501_v52 }
 0x3d0   : > { %v1252_v10 = vmax.f32 %v1211_v9, 0.0 }
 0x3d2   : > { %2414 = vmatmul.msk.f32.gmra.mxu2 %vm749_vm0, %v1252_v10 }
 0x3d5   : > { %v1213_v13 = vpop.f32.mrf.mxu1 }
 0x3d6   : > { %v1214_v15 = vadd.f32 %v1213_v13, %v3501_v52 }
 0x3d8   : > { %v1253_v16 = vmax.f32 %v1214_v15, 0.0 }
 0x3da   : > { %2415 = vmatmul.msk.f32.gmra.mxu2 %vm749_vm0, %v1253_v16 }
 0x3dd   : > { %v1216_v20 = vpop.f32.mrf.mxu1 }
 0x3de   : > { %v1217_v21 = vadd.f32 %v1216_v20, %v3501_v52 }
 0x3e0   : > { %v1254_v56 = vmax.f32 %v1217_v21, 0.0 }
 0x3e2   : > { %2416 = vmatmul.msk.f32.gmra.mxu2 %vm749_vm0, %v1254_v56 }
 0x3e5   : > { %v1219_v26 = vpop.f32.mrf.mxu1 }
 0x3e6   : > { %v1220_v60 = vadd.f32 %v1219_v26, %v3501_v52 }
 0x3e8   : > { %v1255_v28 = vmax.f32 %v1220_v60, 0.0 }
 0x3ea   : > { %2417 = vmatmul.msk.f32.gmra.mxu2 %vm749_vm0, %v1255_v28 }
 0x3ed   : > { %v1222_v31 = vpop.f32.mrf.mxu1 }
 0x3ee   : > { %v1223_v2 = vadd.f32 %v1222_v31, %v3501_v52 }
 0x3f0   : > { %v1256_v32 = vmax.f32 %v1223_v2, 0.0 }
 0x3f2   : > { %2418 = vmatmul.msk.f32.gmra.mxu2 %vm749_vm0, %v1256_v32 }
 0x3f5   : > { %v1225_v8 = vpop.f32.mrf.mxu1 }
 0x3f6   : > { %v1226_v35 = vadd.f32 %v1225_v8, %v3501_v52 }
 0x3f8   : > { %v1257_v36 = vmax.f32 %v1226_v35, 0.0 }
 0x3fa   : > { %2419 = vmatmul.msk.f32.gmra.mxu2 %vm749_vm0, %v1257_v36 }
 0x3fd   : > { %v1228_v39 = vpop.f32.mrf.mxu1 }
 0x3fe   : > { %v1229_v40 = vadd.f32 %v1228_v39, %v3501_v52 }
 0x400   : > { %v1258_v41 = vmax.f32 %v1229_v40, 0.0 }
 0x402   : > { %2420 = vmatmul.msk.f32.gmra.mxu2 %vm749_vm0, %v1258_v41 }
 0x405   : > { %v1231_v43 = vpop.f32.mrf.mxu1 }
 0x406   : > { %v1232_v44 = vadd.f32 %v1231_v43, %v3501_v52 }
 0x408   : > { %v1259_v45 = vmax.f32 %v1232_v44, 0.0 }
 0x40a   : > { %2421 = vmatmul.msk.f32.gmra.mxu2 %vm749_vm0, %v1259_v45 }
 0x40d   : > { %v1234_v47 = vpop.f32.mrf.mxu1 }
 0x40e   : > { %v1235_v22 = vadd.f32 %v1234_v47, %v3501_v52 }
 0x410   : > { %v1260_v48 = vmax.f32 %v1235_v22, 0.0 }
 0x412   : > { %2422 = vmatmul.msk.f32.gmra.mxu2 %vm749_vm0, %v1260_v48 }
 0x415   : > { %v1237_v51 = vpop.f32.mrf.mxu1 }
 0x416   : > { %v1238_v53 = vadd.f32 %v1237_v51, %v3501_v52 }
 0x418   : > { %v1261_v55 = vmax.f32 %v1238_v53, 0.0 }
 0x41a   : > { %2423 = vmatmul.msk.f32.gmra.mxu2 %vm749_vm0, %v1261_v55 }
 0x41d   : > { %v1240_v57 = vpop.f32.mrf.mxu1 }
 0x41e   : > { %v1241_v58 = vadd.f32 %v1240_v57, %v3501_v52  ;;  %v3556_v57 = vperm.slane %v1436_v27, 0 }
 0x420   : > { %v1262_v59 = vmax.f32 %v1241_v58, 0.0 }
 0x422   : > { %2424 = vmatmul.msk.f32.gmra.mxu2 %vm749_vm0, %v1262_v59 }
 0x425   : > { %v1243_v61 = vpop.f32.mrf.mxu1 }
 0x426   : > { %v1244_v62 = vadd.f32 %v1243_v61, %v3501_v52 }
 0x428   : > { %v1263_v63 = vmax.f32 %v1244_v62, 0.0 }
 0x42a   : > { %2425 = vmatmul.msk.f32.gmra.mxu2 %vm749_vm0, %v1263_v63 }
 0x42d   : > { %v1246_v0 = vpop.f32.mrf.mxu1 }
 0x42e   : > { %v1247_v1 = vadd.f32 %v1246_v0, %v3501_v52 }
 0x430   : > { %v1264_v3 = vmax.f32 %v1247_v1, 0.0 }
 0x432   : > { %2426 = vmatmul.msk.f32.gmra.mxu2 %vm749_vm0, %v1264_v3 }
 0x43d   : > { %v1339_v5 = vpop.f32.mrf.mxu2 }
 0x43e   : > { %v1340_v6 = vadd.f32 %v1339_v5, %v3535_v4 }
 0x440   : > { %v1387_v7 = vmax.f32 %v1340_v6, 0.0 }
 0x442   : > { %1458 = vmatmul.f32.vlgmr.msra.gmra.mxu3 %v1387_v7  ;;  %1523 = vmatmul.f32.vlgmr.msra.gmra.mxu0 %v1387_v7 }
 0x445   : > { %v1342_v9 = vpop.f32.mrf.mxu2 }
 0x446   : > { %v1343_v10 = vadd.f32 %v1342_v9, %v3535_v4 }
 0x448   : > { %v1388_v11 = vmax.f32 %v1343_v10, 0.0 }
 0x44a   : > { %1461 = vmatmul.f32.gmra.mxu3 %v1388_v11  ;;  %1526 = vmatmul.f32.gmra.mxu0 %v1388_v11 }
 0x44d   : > { %v1345_v12 = vpop.f32.mrf.mxu2 }
 0x44e   : > { %v1346_v52 = vadd.f32 %v1345_v12, %v3535_v4 }
 0x450   : > { %v1389_v13 = vmax.f32 %v1346_v52, 0.0 }
 0x452   : > { %1464 = vmatmul.f32.gmra.mxu3 %v1389_v13  ;;  %1529 = vmatmul.f32.gmra.mxu0 %v1389_v13 }
 0x455   : > { %v1348_v15 = vpop.f32.mrf.mxu2 }
 0x456   : > { %v1349_v16 = vadd.f32 %v1348_v15, %v3535_v4 }
 0x458   : > { %v1390_v17 = vmax.f32 %v1349_v16, 0.0 }
 0x45a   : > { %1467 = vmatmul.f32.gmra.mxu3 %v1390_v17  ;;  %1532 = vmatmul.f32.gmra.mxu0 %v1390_v17 }
 0x45d   : > { %v1351_v19 = vpop.f32.mrf.mxu2 }
 0x45e   : > { %v1352_v20 = vadd.f32 %v1351_v19, %v3535_v4 }
 0x460   : > { %v1391_v21 = vmax.f32 %v1352_v20, 0.0 }
 0x462   : > { %1470 = vmatmul.f32.gmra.mxu3 %v1391_v21  ;;  %1535 = vmatmul.f32.gmra.mxu0 %v1391_v21 }
 0x465   : > { %v1354_v56 = vpop.f32.mrf.mxu2 }
 0x466   : > { %v1355_v23 = vadd.f32 %v1354_v56, %v3535_v4 }
 0x468   : > { %v1392_v24 = vmax.f32 %v1355_v23, 0.0 }
 0x46a   : > { %1473 = vmatmul.f32.gmra.mxu3 %v1392_v24  ;;  %1538 = vmatmul.f32.gmra.mxu0 %v1392_v24 }
 0x46d   : > { %v1357_v26 = vpop.f32.mrf.mxu2 }
 0x46e   : > { %v1358_v60 = vadd.f32 %v1357_v26, %v3535_v4 }
 0x470   : > { %v1393_v28 = vmax.f32 %v1358_v60, 0.0 }
 0x472   : > { %1476 = vmatmul.f32.gmra.mxu3 %v1393_v28  ;;  %1541 = vmatmul.f32.gmra.mxu0 %v1393_v28 }
 0x475   : > { %v1360_v29 = vpop.f32.mrf.mxu2 }
 0x476   : > { %v1361_v30 = vadd.f32 %v1360_v29, %v3535_v4 }
 0x478   : > { %v1394_v31 = vmax.f32 %v1361_v30, 0.0 }
 0x47a   : > { %1479 = vmatmul.f32.gmra.mxu3 %v1394_v31  ;;  %1544 = vmatmul.f32.gmra.mxu0 %v1394_v31 }
 0x47d   : > { %v1363_v2 = vpop.f32.mrf.mxu2 }
 0x47e   : > { %v1364_v32 = vadd.f32 %v1363_v2, %v3535_v4 }
 0x480   : > { %v1395_v33 = vmax.f32 %v1364_v32, 0.0 }
 0x482   : > { %1482 = vmatmul.f32.gmra.mxu3 %v1395_v33  ;;  %1547 = vmatmul.f32.gmra.mxu0 %v1395_v33 }
 0x485   : > { %v1366_v34 = vpop.f32.mrf.mxu2 }
 0x486   : > { %v1367_v8 = vadd.f32 %v1366_v34, %v3535_v4 }
 0x488   : > { %v1396_v35 = vmax.f32 %v1367_v8, 0.0 }
 0x48a   : > { %1485 = vmatmul.f32.gmra.mxu3 %v1396_v35  ;;  %1550 = vmatmul.f32.gmra.mxu0 %v1396_v35 }
 0x48d   : > { %v1369_v36 = vpop.f32.mrf.mxu2 }
 0x48e   : > { %v1370_v37 = vadd.f32 %v1369_v36, %v3535_v4 }
 0x490   : > { %v1397_v38 = vmax.f32 %v1370_v37, 0.0 }
 0x492   : > { %1488 = vmatmul.f32.gmra.mxu3 %v1397_v38  ;;  %1553 = vmatmul.f32.gmra.mxu0 %v1397_v38 }
 0x495   : > { %v1372_v39 = vpop.f32.mrf.mxu2 }
 0x496   : > { %v1373_v40 = vadd.f32 %v1372_v39, %v3535_v4 }
 0x498   : > { %v1398_v41 = vmax.f32 %v1373_v40, 0.0 }
 0x49a   : > { %1491 = vmatmul.f32.gmra.mxu3 %v1398_v41  ;;  %1556 = vmatmul.f32.gmra.mxu0 %v1398_v41 }
 0x49d   : > { %v1375_v14 = vpop.f32.mrf.mxu2 }
 0x49e   : > { %v1376_v42 = vadd.f32 %v1375_v14, %v3535_v4 }
 0x4a0   : > { %v1399_v43 = vmax.f32 %v1376_v42, 0.0 }
 0x4a2   : > { %1494 = vmatmul.f32.gmra.mxu3 %v1399_v43  ;;  %1559 = vmatmul.f32.gmra.mxu0 %v1399_v43 }
 0x4a5   : > { %v1378_v44 = vpop.f32.mrf.mxu2 }
 0x4a6   : > { %v1379_v45 = vadd.f32 %v1378_v44, %v3535_v4 }
 0x4a8   : > { %v1400_v18 = vmax.f32 %v1379_v45, 0.0 }
 0x4aa   : > { %1497 = vmatmul.f32.gmra.mxu3 %v1400_v18  ;;  %1562 = vmatmul.f32.gmra.mxu0 %v1400_v18 }
 0x4ad   : > { %v1381_v46 = vpop.f32.mrf.mxu2 }
 0x4ae   : > { %v1382_v47 = vadd.f32 %v1381_v46, %v3535_v4 }
 0x4b0   : > { %v1401_v22 = vmax.f32 %v1382_v47, 0.0 }
 0x4b2   : > { %1500 = vmatmul.f32.gmra.mxu3 %v1401_v22  ;;  %1565 = vmatmul.f32.gmra.mxu0 %v1401_v22 }
 0x4b5   : > { %v1384_v48 = vpop.f32.mrf.mxu2 }
 0x4b6   : > { %v1385_v49 = vadd.f32 %v1384_v48, %v3535_v4 }
 0x4b8   : > { %v1402_v25 = vmax.f32 %v1385_v49, 0.0 }
 0x4ba   : > { %1503 = vmatmul.f32.gmra.mxu3 %v1402_v25  ;;  %1568 = vmatmul.f32.gmra.mxu0 %v1402_v25 }
 0x4bf   : > { %v1524_v51 = vpop.f32.mrf.mxu0 }
 0x4c0   : > { %v1525_v53 = vadd.f32 %v1524_v51, %v3553_v50 }
 0x4c2   : > { %v2428_v55 = vmul.f32 -1.442695, %v1525_v53 }
 0x4c4   : > { %2576 = vpow2.f32 %v2428_v55 }
 0x4c5   : > { %v1459_v58 = vpop.f32.mrf.mxu3 }
 0x4c6   : > { %v1460_v59 = vadd.f32 %v1459_v58, %v3556_v57 }
 0x4c7   : > { %v1527_v54 = vpop.f32.mrf.mxu0 }
 0x4c8   : > { %v2427_v61 = vmul.f32 -1.442695, %v1460_v59  ;;  %v1528_v62 = vadd.f32 %v1527_v54, %v3553_v50 }
 0x4ca   : > { %v2577_v63 = vpop.eup %2576  ;;  %2578 = vpow2.f32 %v2427_v61  ;;  %v2430_v0 = vmul.f32 -1.442695, %v1528_v62 }
 0x4cb   : > { %v1669_v1 = vadd.f32 1.0, %v2577_v63 }
 0x4cc   : > { %2580 = vpow2.f32 %v2430_v0 }
 0x4cd   : > { %2582 = vrcp.f32 %v1669_v1  ;;  %v1462_v3 = vpop.f32.mrf.mxu3  ;;  %v1724_v19 = vand.u32 2147483647, %v1669_v1  ;;  %v1726_v20 = vand.u32 2147483648, %v1669_v1  ;;  %vm1720_vm4 = vweird.f32 %v1669_v1 }
 0x4ce   : > { %v1463_v4 = vadd.f32 %v1462_v3, %v3556_v57 }
 0x4cf   : > { %v1530_v5 = vpop.f32.mrf.mxu0  ;;  %vm1725_vm6 = vcmp.eq.f32.partialorder %v1724_v19, 8.507059e+37  ;;  %v1727_v32 = vor.u32 1.1754944e-38, %v1726_v20 }
 0x4d0   : > { %v2579_v6 = vpop.eup %2578  ;;  %v2429_v7 = vmul.f32 -1.442695, %v1463_v4  ;;  %v1531_v9 = vadd.f32 %v1530_v5, %v3553_v50 }
 0x4d1   : > { %v1668_v10 = vadd.f32 1.0, %v2579_v6 }
 0x4d2   : > { %v2581_v11 = vpop.eup %2580  ;;  %2584 = vpow2.f32 %v2429_v7  ;;  %v2432_v12 = vmul.f32 -1.442695, %v1531_v9 }
 0x4d3   : > { %v2583_v52 = vpop.eup %2582  ;;  %2586 = vrcp.f32 %v1668_v10  ;;  %v3562_v15 = vadd.f32 1.0, %v2581_v11  ;;  %v1709_v38 = vand.u32 2147483647, %v1668_v10  ;;  %v1711_v39 = vand.u32 2147483648, %v1668_v10 }
 0x4d4   : > { %v1716_v13 = vmul.f32 %v2583_v52, %v1669_v1  ;;  %2588 = vpow2.f32 %v2432_v12  ;;  %vm1721_vm3 = vweird.f32 %v2583_v52  ;;  %vm1705_vm8 = vweird.f32 %v1668_v10 }
 0x4d5   : > { %v1465_v16 = vpop.f32.mrf.mxu3  ;;  %2590 = vrcp.f32 %v3562_v15  ;;  %vm1722_vm5 = vmor %vm1720_vm4, %vm1721_vm3  ;;  %v1754_v43 = vand.u32 2147483647, %v3562_v15  ;;  %v1756_v18 = vand.u32 2147483648, %v3562_v15  ;;  %vm1710_vm10 = vcmp.eq.f32.partialorder %v1709_v38, 8.507059e+37 }
 0x4d6   : > { %v1717_v17 = vsub.f32 1.0, %v1716_v13  ;;  %v1466_v21 = vadd.f32 %v1465_v16, %v3556_v57  ;;  %v1712_v48 = vor.u32 1.1754944e-38, %v1711_v39  ;;  %vm1750_vm12 = vweird.f32 %v3562_v15 }
 0x4d7   : > { %v1533_v56 = vpop.f32.mrf.mxu0  ;;  %vm1755_vm14 = vcmp.eq.f32.partialorder %v1754_v43, 8.507059e+37  ;;  %v1757_v62 = vor.u32 1.1754944e-38, %v1756_v18 }
 0x4d8   : > { %v2585_v23 = vpop.eup %2584  ;;  %v1718_v24 = vmul.f32 %v2583_v52, %v1717_v17  ;;  %v1534_v26 = vadd.f32 %v1533_v56, %v3553_v50  ;;  %v2431_v29 = vmul.f32 -1.442695, %v1466_v21 }
 0x4d9   : > { %v2587_v60 = vpop.eup %2586  ;;  %v3567_v28 = vadd.f32 1.0, %v2585_v23 }
 0x4da   : > { %v2589_v30 = vpop.eup %2588  ;;  %v1719_v31 = vadd.f32 %v2583_v52, %v1718_v24  ;;  %v1701_v2 = vmul.f32 %v2587_v60, %v1668_v10  ;;  %v2434_v33 = vmul.f32 -1.442695, %v1534_v26  ;;  %vm1706_vm7 = vweird.f32 %v2587_v60 }
 0x4db   : > { %2592 = vrcp.f32 %v3567_v28  ;;  %v2591_v34 = vpop.eup %2590  ;;  %v3570_v36 = vadd.f32 1.0, %v2589_v30  ;;  %vm1707_vm9 = vmor %vm1705_vm8, %vm1706_vm7  ;;  %v1741_v3 = vand.u32 2147483648, %v3567_v28  ;;  %v1739_v9 = vand.u32 2147483647, %v3567_v28 }
 0x4dc   : > { %v1723_v8 = vsel %vm1722_vm5, %v2583_v52, %v1719_v31  ;;  %v1702_v35 = vsub.f32 1.0, %v1701_v2  ;;  %2594 = vpow2.f32 %v2431_v29  ;;  %v1746_v40 = vmul.f32 %v2591_v34, %v3562_v15 }
 0x4dd   : > { %v1728_v37 = vsel %vm1725_vm6, %v1727_v32, %v1723_v8  ;;  %v1468_v41 = vpop.f32.mrf.mxu3  ;;  %2596 = vrcp.f32 %v3570_v36  ;;  %vm1751_vm11 = vweird.f32 %v2591_v34  ;;  %vm1735_vm0 = vweird.f32 %v3567_v28 }
 0x4de   : > { %2181 = vst [vmem:[%s3575_s19 + $0x8] sm:$0xff] %v1728_v37  ;;  %v1703_v14 = vmul.f32 %v2587_v60, %v1702_v35  ;;  %v1747_v42 = vsub.f32 1.0, %v1746_v40  ;;  %2598 = vpow2.f32 %v2434_v33  ;;  %v1469_v46 = vadd.f32 %v1468_v41, %v3556_v57  ;;  %vm1752_vm13 = vmor %vm1750_vm12, %vm1751_vm11 }
 0x4df   : > { %v1536_v44 = vpop.f32.mrf.mxu0  ;;  %v1784_v13 = vand.u32 2147483647, %v3570_v36  ;;  %v1786_v15 = vand.u32 2147483648, %v3570_v36  ;;  %v1742_v17 = vor.u32 1.1754944e-38, %v1741_v3  ;;  %vm1740_vm3 = vcmp.eq.f32.partialorder %v1739_v9, 8.507059e+37 }
 0x4e0   : > { %v1704_v45 = vadd.f32 %v2587_v60, %v1703_v14  ;;  %v1537_v47 = vadd.f32 %v1536_v44, %v3553_v50  ;;  %v1748_v49 = vmul.f32 %v2591_v34, %v1747_v42  ;;  %v2433_v53 = vmul.f32 -1.442695, %v1469_v46 }
 0x4e1   : > { %v2593_v22 = vpop.eup %2592  ;;  %vm1780_vm4 = vweird.f32 %v3570_v36  ;;  %vm1785_vm6 = vcmp.eq.f32.partialorder %v1784_v13, 8.507059e+37  ;;  %v1787_v29 = vor.u32 1.1754944e-38, %v1786_v15 }
 0x4e2   : > { %v2595_v25 = vpop.eup %2594  ;;  %v1708_v27 = vsel %vm1707_vm9, %v2587_v60, %v1704_v45  ;;  %v1731_v51 = vmul.f32 %v2593_v22, %v3567_v28  ;;  %v1749_v58 = vadd.f32 %v2591_v34, %v1748_v49  ;;  %v2436_v54 = vmul.f32 -1.442695, %v1537_v47 }
 0x4e3   : > { %v1713_v55 = vsel %vm1710_vm10, %v1712_v48, %v1708_v27  ;;  %v3585_v59 = vadd.f32 1.0, %v2595_v25  ;;  %v2597_v61 = vpop.eup %2596  ;;  %2600 = vpow2.f32 %v2433_v53  ;;  %vm1736_vm15 = vweird.f32 %v2593_v22 }
 0x4e4   : > { %2180 = vst [vmem:[%s3575_s19] sm:$0xff] %v1713_v55  ;;  %v1732_v63 = vsub.f32 1.0, %v1731_v51  ;;  %v2599_v0 = vpop.eup %2598  ;;  %v1753_v1 = vsel %vm1752_vm13, %v2591_v34, %v1749_v58  ;;  %v1776_v4 = vmul.f32 %v2597_v61, %v3570_v36  ;;  %vm1737_vm1 = vmor %vm1735_vm0, %vm1736_vm15  ;;  %vm1781_vm2 = vweird.f32 %v2597_v61 }
 0x4e5   : > { %2602 = vrcp.f32 %v3585_v59  ;;  %v1471_v5 = vpop.f32.mrf.mxu3  ;;  %v1758_v6 = vsel %vm1755_vm14, %v1757_v62, %v1753_v1  ;;  %v3594_v11 = vadd.f32 1.0, %v2599_v0  ;;  %vm1782_vm5 = vmor %vm1780_vm4, %vm1781_vm2  ;;  %v1769_v32 = vand.u32 2147483647, %v3585_v59 }
 0x4e6   : > { %v1733_v7 = vmul.f32 %v2593_v22, %v1732_v63  ;;  %2183 = vst [vmem:[%s3575_s19 + $0x18] sm:$0xff] %v1758_v6  ;;  %v1777_v10 = vsub.f32 1.0, %v1776_v4  ;;  %2604 = vpow2.f32 %v2436_v54  ;;  %v1472_v16 = vadd.f32 %v1471_v5, %v3556_v57 }
 0x4e7   : > { %v1539_v12 = vpop.f32.mrf.mxu0  ;;  %2606 = vrcp.f32 %v3594_v11  ;;  %v1771_v33 = vand.u32 2147483648, %v3585_v59  ;;  %vm1765_vm8 = vweird.f32 %v3585_v59  ;;  %vm3615_vm9 = vcmp.eq.f32.partialorder %v1769_v32, 8.507059e+37 }
 0x4e8   : > { %v1734_v52 = vadd.f32 %v2593_v22, %v1733_v7  ;;  %v1778_v19 = vmul.f32 %v2597_v61, %v1777_v10  ;;  %v1540_v56 = vadd.f32 %v1539_v12, %v3553_v50  ;;  %v2435_v28 = vmul.f32 -1.442695, %v1472_v16 }
 0x4e9   : > { %v2601_v20 = vpop.eup %2600  ;;  %v1772_v43 = vor.u32 1.1754944e-38, %v1771_v33  ;;  %vm1810_vm11 = vweird.f32 %v3594_v11  ;;  %v1814_v47 = vand.u32 2147483647, %v3594_v11 }
 0x4ea   : > { %v1738_v21 = vsel %vm1737_vm1, %v2593_v22, %v1734_v52  ;;  %v1779_v26 = vadd.f32 %v2597_v61, %v1778_v19  ;;  %v3602_v60 = vadd.f32 1.0, %v2601_v20  ;;  %v2438_v37 = vmul.f32 -1.442695, %v1540_v56 }
 0x4eb   : > { %v2603_v23 = vpop.eup %2602  ;;  %v1743_v24 = vsel %vm1740_vm3, %v1742_v17, %v1738_v21  ;;  %v1816_v22 = vand.u32 2147483648, %v3594_v11  ;;  %vm1815_vm14 = vcmp.eq.f32.partialorder %v1814_v47, 8.507059e+37 }
 0x4ec   : > { %2182 = vst [vmem:[%s3575_s19 + $0x10] sm:$0xff] %v1743_v24  ;;  %v1761_v30 = vmul.f32 %v2603_v23, %v3585_v59  ;;  %v2605_v31 = vpop.eup %2604  ;;  %v1783_v2 = vsel %vm1782_vm5, %v2597_v61, %v1779_v26  ;;  %2608 = vrcp.f32 %v3602_v60  ;;  %vm1766_vm7 = vweird.f32 %v2603_v23 }
 0x4ed   : > { %v1474_v34 = vpop.f32.mrf.mxu3  ;;  %v1788_v8 = vsel %vm1785_vm6, %v1787_v29, %v1783_v2  ;;  %v3609_v36 = vadd.f32 1.0, %v2605_v31  ;;  %v2607_v38 = vpop.eup %2606  ;;  %2610 = vpow2.f32 %v2435_v28  ;;  %vm1767_vm10 = vmor %vm1765_vm8, %vm1766_vm7  ;;  %v1799_v55 = vand.u32 2147483647, %v3602_v60 }
 0x4ee   : > { %v1762_v35 = vsub.f32 1.0, %v1761_v30  ;;  %2185 = vst [vmem:[%s3575_s19 + $0x28] sm:$0xff] %v1788_v8  ;;  %v1475_v39 = vadd.f32 %v1474_v34, %v3556_v57  ;;  %v1806_v14 = vmul.f32 %v2607_v38, %v3594_v11  ;;  %vm1811_vm12 = vweird.f32 %v2607_v38 }
 0x4ef   : > { %v1542_v40 = vpop.f32.mrf.mxu0  ;;  %2612 = vrcp.f32 %v3609_v36  ;;  %v1801_v62 = vand.u32 2147483648, %v3602_v60  ;;  %vm1812_vm13 = vmor %vm1810_vm11, %vm1811_vm12  ;;  %v1817_v1 = vor.u32 1.1754944e-38, %v1816_v22  ;;  %vm1795_vm0 = vweird.f32 %v3602_v60 }
 0x4f0   : > { %v1763_v41 = vmul.f32 %v2603_v23, %v1762_v35  ;;  %v1807_v45 = vsub.f32 1.0, %v1806_v14  ;;  %2614 = vpow2.f32 %v2438_v37  ;;  %v2437_v18 = vmul.f32 -1.442695, %v1475_v39 }
 0x4f1   : > { %v1543_v48 = vadd.f32 %v1542_v40, %v3553_v50  ;;  %vm3637_vm1 = vcmp.eq.f32.partialorder %v1799_v55, 8.507059e+37  ;;  %v1802_v52 = vor.u32 1.1754944e-38, %v1801_v62  ;;  %v1844_v17 = vand.u32 2147483647, %v3609_v36 }
 0x4f2   : > { %v1764_v44 = vadd.f32 %v2603_v23, %v1763_v41  ;;  %v2609_v46 = vpop.eup %2608  ;;  %v1808_v25 = vmul.f32 %v2607_v38, %v1807_v45  ;;  %2616 = vpow2.f32 %v2437_v18  ;;  %v1846_v19 = vand.u32 2147483648, %v3609_v36 }
 0x4f3   : > { %v1791_v27 = vmul.f32 %v2609_v46, %v3602_v60  ;;  %v2611_v51 = vpop.eup %2610  ;;  %v2440_v58 = vmul.f32 -1.442695, %v1543_v48  ;;  %vm1796_vm15 = vweird.f32 %v2609_v46  ;;  %vm1840_vm4 = vweird.f32 %v3609_v36 }
 0x4f4   : > { %v1768_v49 = vsel %vm1767_vm10, %v2603_v23, %v1764_v44  ;;  %v1809_v54 = vadd.f32 %v2607_v38, %v1808_v25  ;;  %v3630_v63 = vadd.f32 1.0, %v2611_v51  ;;  %vm1797_vm2 = vmor %vm1795_vm0, %vm1796_vm15  ;;  %vm1845_vm6 = vcmp.eq.f32.partialorder %v1844_v17, 8.507059e+37 }
 0x4f5   : > { %v1773_v53 = vsel %vm3615_vm9, %v1772_v43, %v1768_v49  ;;  %v1477_v59 = vpop.f32.mrf.mxu3  ;;  %v1792_v61 = vsub.f32 1.0, %v1791_v27  ;;  %v2613_v0 = vpop.eup %2612  ;;  %2618 = vpow2.f32 %v2440_v58  ;;  %v1847_v32 = vor.u32 1.1754944e-38, %v1846_v19 }
 0x4f6   : > { %2184 = vst [vmem:[%s3575_s19 + $0x20] sm:$0xff] %v1773_v53  ;;  %v1478_v3 = vadd.f32 %v1477_v59, %v3556_v57  ;;  %v2615_v5 = vpop.eup %2614  ;;  %v1813_v6 = vsel %vm1812_vm13, %v2607_v38, %v1809_v54  ;;  %v1836_v9 = vmul.f32 %v2613_v0, %v3609_v36  ;;  %2620 = vrcp.f32 %v3630_v63 }
 0x4f7   : > { %v1545_v4 = vpop.f32.mrf.mxu0  ;;  %v1793_v7 = vmul.f32 %v2609_v46, %v1792_v61  ;;  %v1818_v10 = vsel %vm1815_vm14, %v1817_v1, %v1813_v6  ;;  %v3643_v15 = vadd.f32 1.0, %v2615_v5  ;;  %vm1841_vm3 = vweird.f32 %v2613_v0 }
 0x4f8   : > { %2187 = vst [vmem:[%s3575_s19 + $0x38] sm:$0xff] %v1818_v10  ;;  %v1837_v13 = vsub.f32 1.0, %v1836_v9  ;;  %v2617_v16 = vpop.eup %2616  ;;  %v2439_v20 = vmul.f32 -1.442695, %v1478_v3  ;;  %v1546_v23 = vadd.f32 %v1545_v4, %v3553_v50  ;;  %v1829_v60 = vand.u32 2147483647, %v3630_v63  ;;  %vm1842_vm5 = vmor %vm1840_vm4, %vm1841_vm3 }
 0x4f9   : > { %v1794_v11 = vadd.f32 %v2609_v46, %v1793_v7  ;;  %2622 = vrcp.f32 %v3643_v15  ;;  %v3654_v30 = vadd.f32 1.0, %v2617_v16  ;;  %v1831_v33 = vand.u32 2147483648, %v3630_v63 }
 0x4fa   : > { %v1838_v56 = vmul.f32 %v2613_v0, %v1837_v13  ;;  %2624 = vpow2.f32 %v2439_v20  ;;  %v1874_v34 = vand.u32 2147483647, %v3643_v15  ;;  %v2442_v37 = vmul.f32 -1.442695, %v1546_v23 }
 0x4fb   : > { %v1798_v21 = vsel %vm1797_vm2, %v2609_v46, %v1794_v11  ;;  %v2619_v24 = vpop.eup %2618  ;;  %2626 = vrcp.f32 %v3654_v30  ;;  %vm1825_vm7 = vweird.f32 %v3630_v63  ;;  %v1876_v39 = vand.u32 2147483648, %v3643_v15 }
 0x4fc   : > { %v1803_v26 = vsel %vm3637_vm1, %v1802_v52, %v1798_v21  ;;  %v1839_v29 = vadd.f32 %v2613_v0, %v1838_v56  ;;  %v3656_v31 = vadd.f32 1.0, %v2619_v24  ;;  %v2621_v2 = vpop.eup %2620  ;;  %vm3666_vm8 = vcmp.eq.f32.partialorder %v1829_v60, 8.507059e+37 }
 0x4fd   : > { %v1480_v28 = vpop.f32.mrf.mxu3  ;;  %2186 = vst [vmem:[%s3575_s19 + $0x30] sm:$0xff] %v1803_v26  ;;  %v1821_v36 = vmul.f32 %v2621_v2, %v3630_v63  ;;  %v1832_v43 = vor.u32 1.1754944e-38, %v1831_v33  ;;  %vm1870_vm9 = vweird.f32 %v3643_v15  ;;  %vm3674_vm10 = vcmp.eq.f32.partialorder %v1874_v34, 8.507059e+37 }
 0x4fe   : > { %v1843_v35 = vsel %vm1842_vm5, %v2613_v0, %v1839_v29  ;;  %2628 = vrcp.f32 %v3656_v31  ;;  %v1481_v42 = vadd.f32 %v1480_v28, %v3556_v57  ;;  %vm1826_vm11 = vweird.f32 %v2621_v2 }
 0x4ff   : > { %v1548_v8 = vpop.f32.mrf.mxu0  ;;  %v1848_v38 = vsel %vm1845_vm6, %v1847_v32, %v1843_v35  ;;  %v2623_v40 = vpop.eup %2622  ;;  %v1822_v41 = vsub.f32 1.0, %v1821_v36  ;;  %v1859_v47 = vand.u32 2147483647, %v3654_v30  ;;  %2630 = vpow2.f32 %v2442_v37  ;;  %vm1827_vm13 = vmor %vm1825_vm7, %vm1826_vm11 }
 0x500   : > { %2189 = vst [vmem:[%s3575_s19 + $0x48] sm:$0xff] %v1848_v38  ;;  %v1866_v44 = vmul.f32 %v2623_v40, %v3643_v15  ;;  %v2625_v18 = vpop.eup %2624  ;;  %v1877_v48 = vor.u32 1.1754944e-38, %v1876_v39  ;;  %vm1855_vm12 = vweird.f32 %v3654_v30  ;;  %v1861_v53 = vand.u32 2147483648, %v3654_v30 }
 0x501   : > { %v1823_v46 = vmul.f32 %v2621_v2, %v1822_v41  ;;  %v3680_v49 = vadd.f32 1.0, %v2625_v18  ;;  %v2627_v27 = vpop.eup %2626  ;;  %v1904_v55 = vand.u32 2147483647, %v3656_v31  ;;  %v2441_v58 = vmul.f32 -1.442695, %v1481_v42 }
 0x502   : > { %v1867_v22 = vsub.f32 1.0, %v1866_v44  ;;  %vm1871_vm14 = vweird.f32 %v2623_v40  ;;  %v1851_v54 = vmul.f32 %v2627_v27, %v3654_v30  ;;  %vm1900_vm15 = vweird.f32 %v3656_v31 }
 0x503   : > { %v1824_v51 = vadd.f32 %v2621_v2, %v1823_v46  ;;  %2632 = vrcp.f32 %v3680_v49  ;;  %vm3689_vm0 = vcmp.eq.f32.partialorder %v1859_v47, 8.507059e+37  ;;  %v1549_v3 = vadd.f32 %v1548_v8, %v3553_v50  ;;  %vm1872_vm1 = vmor %vm1870_vm9, %vm1871_vm14 }
 0x504   : > { %v1868_v59 = vmul.f32 %v2623_v40, %v1867_v22  ;;  %v2629_v62 = vpop.eup %2628  ;;  %v1852_v6 = vsub.f32 1.0, %v1851_v54  ;;  %vm1856_vm2 = vweird.f32 %v2627_v27  ;;  %v1862_v10 = vor.u32 1.1754944e-38, %v1861_v53 }
 0x505   : > { %v1483_v25 = vpop.f32.mrf.mxu3  ;;  %v1828_v0 = vsel %vm1827_vm13, %v2621_v2, %v1824_v51  ;;  %v1896_v7 = vmul.f32 %v2629_v62, %v3656_v31  ;;  %v2631_v9 = vpop.eup %2630  ;;  %v1906_v12 = vand.u32 2147483648, %v3656_v31  ;;  %2634 = vpow2.f32 %v2441_v58  ;;  %vm1857_vm4 = vmor %vm1855_vm12, %vm1856_vm2 }
 0x506   : > { %v1484_v63 = vadd.f32 %v1483_v25, %v3556_v57  ;;  %v1833_v4 = vsel %vm3666_vm8, %v1832_v43, %v1828_v0  ;;  %v1869_v5 = vadd.f32 %v2623_v40, %v1868_v59  ;;  %v1853_v52 = vmul.f32 %v2627_v27, %v1852_v6 }
 0x507   : > { %v1551_v61 = vpop.f32.mrf.mxu0  ;;  %2188 = vst [vmem:[%s3575_s19 + $0x40] sm:$0xff] %v1833_v4  ;;  %v1897_v13 = vsub.f32 1.0, %v1896_v7  ;;  %v3703_v16 = vadd.f32 1.0, %v2631_v9  ;;  %vm1901_vm3 = vweird.f32 %v2629_v62  ;;  %v2444_v19 = vmul.f32 -1.442695, %v1549_v3 }
 0x508   : > { %v1873_v11 = vsel %vm1872_vm1, %v2623_v40, %v1869_v5  ;;  %v1552_v20 = vadd.f32 %v1551_v61, %v3553_v50  ;;  %v1854_v15 = vadd.f32 %v2627_v27, %v1853_v52  ;;  %v2443_v23 = vmul.f32 -1.442695, %v1484_v63  ;;  %vm1902_vm6 = vmor %vm1900_vm15, %vm1901_vm3 }
 0x509   : > { %v1878_v17 = vsel %vm3674_vm10, %v1877_v48, %v1873_v11  ;;  %v2633_v21 = vpop.eup %2632  ;;  %v1898_v56 = vmul.f32 %v2629_v62, %v1897_v13  ;;  %2636 = vrcp.f32 %v3703_v16  ;;  %vm3713_vm5 = vcmp.eq.f32.partialorder %v1904_v55, 8.507059e+37 }
 0x50a   : > { %2191 = vst [vmem:[%s3575_s19 + $0x58] sm:$0xff] %v1878_v17  ;;  %v1907_v60 = vor.u32 1.1754944e-38, %v1906_v12  ;;  %v1881_v28 = vmul.f32 %v2633_v21, %v3680_v49  ;;  %v1889_v29 = vand.u32 2147483647, %v3680_v49  ;;  %v1858_v2 = vsel %vm1857_vm4, %v2627_v27, %v1854_v15 }
 0x50b   : > { %v1899_v32 = vadd.f32 %v2629_v62, %v1898_v56  ;;  %2638 = vpow2.f32 %v2444_v19  ;;  %v2446_v33 = vmul.f32 -1.442695, %v1552_v20  ;;  %v2635_v8 = vpop.eup %2634  ;;  %v1863_v30 = vsel %vm3689_vm0, %v1862_v10, %v1858_v2 }
 0x50c   : > { %v1882_v35 = vsub.f32 1.0, %v1881_v28  ;;  %vm1886_vm7 = vweird.f32 %v2633_v21  ;;  %v1891_v36 = vand.u32 2147483648, %v3680_v49  ;;  %2190 = vst [vmem:[%s3575_s19 + $0x50] sm:$0xff] %v1863_v30  ;;  %v3726_v38 = vadd.f32 1.0, %v2635_v8 }
 0x50d   : > { %v1486_v24 = vpop.f32.mrf.mxu3  ;;  %v1903_v37 = vsel %vm1902_vm6, %v2629_v62, %v1899_v32  ;;  %2640 = vpow2.f32 %v2443_v23  ;;  %vm1885_vm8 = vweird.f32 %v3680_v49  ;;  %vm1890_vm9 = vcmp.eq.f32.partialorder %v1889_v29, 8.507059e+37 }
 0x50e   : > { %v1487_v39 = vadd.f32 %v1486_v24, %v3556_v57  ;;  %v1908_v40 = vsel %vm3713_vm5, %v1907_v60, %v1903_v37  ;;  %v1883_v41 = vmul.f32 %v2633_v21, %v1882_v35  ;;  %2642 = vpow2.f32 %v2446_v33  ;;  %vm1887_vm10 = vmor %vm1885_vm8, %vm1886_vm7 }
 0x50f   : > { %v1554_v34 = vpop.f32.mrf.mxu0  ;;  %v2637_v31 = vpop.eup %2636  ;;  %2193 = vst [vmem:[%s3575_s19 + $0x68] sm:$0xff] %v1908_v40  ;;  %2644 = vrcp.f32 %v3726_v38  ;;  %v1892_v18 = vor.u32 1.1754944e-38, %v1891_v36  ;;  %v1934_v46 = vand.u32 2147483647, %v3703_v16  ;;  %v1936_v47 = vand.u32 2147483648, %v3703_v16 }
 0x510   : > { %v1555_v14 = vadd.f32 %v1554_v34, %v3553_v50  ;;  %v1884_v42 = vadd.f32 %v2633_v21, %v1883_v41  ;;  %v1926_v43 = vmul.f32 %v2637_v31, %v3703_v16  ;;  %v2445_v44 = vmul.f32 -1.442695, %v1487_v39 }
 0x511   : > { %v2639_v45 = vpop.eup %2638  ;;  %v1919_v55 = vand.u32 2147483647, %v3726_v38  ;;  %v1921_v58 = vand.u32 2147483648, %v3726_v38  ;;  %vm1930_vm11 = vweird.f32 %v3703_v16  ;;  %vm1931_vm12 = vweird.f32 %v2637_v31 }
 0x512   : > { %v2448_v22 = vmul.f32 -1.442695, %v1555_v14  ;;  %v1888_v25 = vsel %vm1887_vm10, %v2633_v21, %v1884_v42  ;;  %v1927_v49 = vsub.f32 1.0, %v1926_v43  ;;  %v3739_v27 = vadd.f32 1.0, %v2639_v45  ;;  %vm1932_vm15 = vmor %vm1930_vm11, %vm1931_vm12 }
 0x513   : > { %2646 = vpow2.f32 %v2445_v44  ;;  %v2641_v51 = vpop.eup %2640  ;;  %v1893_v53 = vsel %vm1890_vm9, %v1892_v18, %v1888_v25  ;;  %vm3748_vm13 = vcmp.eq.f32.partialorder %v1934_v46, 8.507059e+37  ;;  %v1937_v5 = vor.u32 1.1754944e-38, %v1936_v47 }
 0x514   : > { %2648 = vpow2.f32 %v2448_v22  ;;  %v2643_v54 = vpop.eup %2642  ;;  %2192 = vst [vmem:[%s3575_s19 + $0x60] sm:$0xff] %v1893_v53  ;;  %v1928_v61 = vmul.f32 %v2637_v31, %v1927_v49  ;;  %v3752_v1 = vadd.f32 1.0, %v2641_v51  ;;  %vm1915_vm14 = vweird.f32 %v3726_v38 }
 0x515   : > { %v1489_v48 = vpop.f32.mrf.mxu3  ;;  %2650 = vrcp.f32 %v3739_v27  ;;  %v2645_v62 = vpop.eup %2644  ;;  %v3754_v3 = vadd.f32 1.0, %v2643_v54  ;;  %vm3759_vm0 = vcmp.eq.f32.partialorder %v1919_v55, 8.507059e+37  ;;  %v1922_v9 = vor.u32 1.1754944e-38, %v1921_v58 }
 0x516   : > { %v1490_v63 = vadd.f32 %v1489_v48, %v3556_v57  ;;  %v1929_v4 = vadd.f32 %v2637_v31, %v1928_v61  ;;  %v1911_v6 = vmul.f32 %v2645_v62, %v3726_v38  ;;  %v1964_v10 = vand.u32 2147483647, %v3739_v27 }
 0x517   : > { %v3743_v59 = vpop.f32.mrf.mxu0  ;;  %2652 = vrcp.f32 %v3752_v1  ;;  %v1966_v13 = vand.u32 2147483648, %v3739_v27  ;;  %vm1916_vm1 = vweird.f32 %v2645_v62  ;;  %vm1960_vm2 = vweird.f32 %v3739_v27 }
 0x518   : > { %v1933_v11 = vsel %vm1932_vm15, %v2637_v31, %v1929_v4  ;;  %v1912_v52 = vsub.f32 1.0, %v1911_v6  ;;  %2654 = vrcp.f32 %v3754_v3  ;;  %v2447_v19 = vmul.f32 -1.442695, %v1490_v63  ;;  %vm1917_vm4 = vmor %vm1915_vm14, %vm1916_vm1 }
 0x519   : > { %v2647_v12 = vpop.eup %2646  ;;  %v1938_v17 = vsel %vm3748_vm13, %v1937_v5, %v1933_v11  ;;  %v1949_v56 = vand.u32 2147483647, %v3752_v1  ;;  %v1951_v23 = vand.u32 2147483648, %v3752_v1  ;;  %v1994_v60 = vand.u32 2147483647, %v3754_v3 }
 0x51a   : > { %v2649_v16 = vpop.eup %2648  ;;  %2195 = vst [vmem:[%s3575_s19 + $0x78] sm:$0xff] %v1938_v17  ;;  %v1913_v15 = vmul.f32 %v2645_v62, %v1912_v52  ;;  %v3773_v24 = vadd.f32 1.0, %v2647_v12  ;;  %v1996_v28 = vand.u32 2147483648, %v3754_v3  ;;  %vm3780_vm3 = vcmp.eq.f32.partialorder %v1964_v10, 8.507059e+37 }
 0x51b   : > { %v2651_v21 = vpop.eup %2650  ;;  %v3778_v29 = vadd.f32 1.0, %v2649_v16  ;;  %v1967_v34 = vor.u32 1.1754944e-38, %v1966_v13  ;;  %vm1945_vm5 = vweird.f32 %v3752_v1  ;;  %vm1990_vm6 = vweird.f32 %v3754_v3 }
 0x51c   : > { %v1956_v26 = vmul.f32 %v2651_v21, %v3739_v27  ;;  %v1914_v32 = vadd.f32 %v2645_v62, %v1913_v15  ;;  %2656 = vrcp.f32 %v3773_v24  ;;  %vm1961_vm7 = vweird.f32 %v2651_v21 }
 0x51d   : > { %v1492_v20 = vpop.f32.mrf.mxu3  ;;  %v2653_v8 = vpop.eup %2652  ;;  %2658 = vrcp.f32 %v3778_v29  ;;  %vm3792_vm8 = vcmp.eq.f32.partialorder %v1949_v56, 8.507059e+37  ;;  %v1952_v40 = vor.u32 1.1754944e-38, %v1951_v23  ;;  %vm3799_vm9 = vcmp.eq.f32.partialorder %v1994_v60, 8.507059e+37  ;;  %vm1962_vm13 = vmor %vm1960_vm2, %vm1961_vm7 }
 0x51e   : > { %v1957_v30 = vsub.f32 1.0, %v1956_v26  ;;  %v2655_v35 = vpop.eup %2654  ;;  %v1918_v36 = vsel %vm1917_vm4, %v2645_v62, %v1914_v32  ;;  %v1941_v37 = vmul.f32 %v2653_v8, %v3752_v1  ;;  %v1997_v42 = vor.u32 1.1754944e-38, %v1996_v28 }
 0x51f   : > { %v1560_v2 = vpop.f32.mrf.mxu0  ;;  %v1923_v38 = vsel %vm3759_vm0, %v1922_v9, %v1918_v36  ;;  %v1986_v14 = vmul.f32 %v2655_v35, %v3754_v3  ;;  %vm1946_vm10 = vweird.f32 %v2653_v8  ;;  %v1979_v44 = vand.u32 2147483647, %v3773_v24 }
 0x520   : > { %v1958_v41 = vmul.f32 %v2651_v21, %v1957_v30  ;;  %2194 = vst [vmem:[%s3575_s19 + $0x70] sm:$0xff] %v1923_v38  ;;  %v1942_v43 = vsub.f32 1.0, %v1941_v37  ;;  %v1981_v45 = vand.u32 2147483648, %v3773_v24  ;;  %vm1991_vm11 = vweird.f32 %v2655_v35  ;;  %vm1947_vm0 = vmor %vm1945_vm5, %vm1946_vm10 }
 0x521   : > { %v1987_v46 = vsub.f32 1.0, %v1986_v14  ;;  %vm1975_vm12 = vweird.f32 %v3773_v24  ;;  %2660 = vpow2.f32 %v2447_v19  ;;  %vm2020_vm14 = vweird.f32 %v3778_v29  ;;  %vm1992_vm2 = vmor %vm1990_vm6, %vm1991_vm11 }
 0x522   : > { %v1959_v18 = vadd.f32 %v2651_v21, %v1958_v41  ;;  %v2657_v22 = vpop.eup %2656  ;;  %v1943_v48 = vmul.f32 %v2653_v8, %v1942_v43  ;;  %v2024_v25 = vand.u32 2147483647, %v3778_v29  ;;  %v1558_v49 = vadd.f32 %v3743_v59, %v3553_v50 }
 0x523   : > { %v1493_v51 = vadd.f32 %v1492_v20, %v3556_v57  ;;  %v2659_v53 = vpop.eup %2658  ;;  %v1988_v58 = vmul.f32 %v2655_v35, %v1987_v46  ;;  %v1971_v54 = vmul.f32 %v2657_v22, %v3773_v24  ;;  %v2026_v61 = vand.u32 2147483648, %v3778_v29 }
 0x524   : > { %v1963_v55 = vsel %vm1962_vm13, %v2651_v21, %v1959_v18  ;;  %v1944_v62 = vadd.f32 %v2653_v8, %v1943_v48  ;;  %vm1976_vm15 = vweird.f32 %v2657_v22  ;;  %v2016_v0 = vmul.f32 %v2659_v53, %v3778_v29 }
 0x525   : > { %v1495_v47 = vpop.f32.mrf.mxu3  ;;  %v1968_v27 = vsel %vm3780_vm3, %v1967_v34, %v1963_v55  ;;  %v1989_v59 = vadd.f32 %v2655_v35, %v1988_v58  ;;  %v1972_v63 = vsub.f32 1.0, %v1971_v54  ;;  %vm2021_vm1 = vweird.f32 %v2659_v53  ;;  %vm1977_vm3 = vmor %vm1975_vm12, %vm1976_vm15 }
 0x526   : > { %2197 = vst [vmem:[%s3575_s19 + $0x88] sm:$0xff] %v1968_v27  ;;  %v2450_v4 = vmul.f32 -1.442695, %v1558_v49  ;;  %v1948_v6 = vsel %vm1947_vm0, %v2653_v8, %v1944_v62  ;;  %v2017_v7 = vsub.f32 1.0, %v2016_v0  ;;  %v2449_v9 = vmul.f32 -1.442695, %v1493_v51  ;;  %vm2022_vm5 = vmor %vm2020_vm14, %vm2021_vm1 }
 0x527   : > { %v1563_v5 = vpop.f32.mrf.mxu0  ;;  %v1561_v10 = vadd.f32 %v1560_v2, %v3553_v50  ;;  %v2661_v12 = vpop.eup %2660  ;;  %v1953_v1 = vsel %vm3792_vm8, %v1952_v40, %v1948_v6  ;;  %v1993_v11 = vsel %vm1992_vm2, %v2655_v35, %v1989_v59  ;;  %v1973_v52 = vmul.f32 %v2657_v22, %v1972_v63 }
 0x528   : > { %2662 = vpow2.f32 %v2450_v4  ;;  %2196 = vst [vmem:[%s3575_s19 + $0x80] sm:$0xff] %v1953_v1  ;;  %v1998_v13 = vsel %vm3799_vm9, %v1997_v42, %v1993_v11  ;;  %v2018_v16 = vmul.f32 %v2659_v53, %v2017_v7  ;;  %v3833_v17 = vadd.f32 1.0, %v2661_v12 }
 0x529   : > { %2664 = vpow2.f32 %v2449_v9  ;;  %2199 = vst [vmem:[%s3575_s19 + $0x98] sm:$0xff] %v1998_v13  ;;  %v1974_v3 = vadd.f32 %v2657_v22, %v1973_v52  ;;  %v2452_v19 = vmul.f32 -1.442695, %v1561_v10  ;;  %v1496_v20 = vadd.f32 %v1495_v47, %v3556_v57 }
 0x52a   : > { %v1564_v21 = vadd.f32 %v1563_v5, %v3553_v50  ;;  %vm1980_vm4 = vcmp.eq.f32.partialorder %v1979_v44, 8.507059e+37  ;;  %v1982_v15 = vor.u32 1.1754944e-38, %v1981_v45  ;;  %v2019_v56 = vadd.f32 %v2659_v53, %v2018_v16 }
 0x52b   : > { %2666 = vrcp.f32 %v3833_v17  ;;  %v1978_v26 = vsel %vm1977_vm3, %v2657_v22, %v1974_v3  ;;  %v2027_v60 = vor.u32 1.1754944e-38, %v2026_v61  ;;  %v2451_v28 = vmul.f32 -1.442695, %v1496_v20 }
 0x52c   : > { %2668 = vpow2.f32 %v2452_v19  ;;  %v1983_v2 = vsel %vm1980_vm4, %v1982_v15, %v1978_v26  ;;  %v2023_v32 = vsel %vm2022_vm5, %v2659_v53, %v2019_v56  ;;  %vm2025_vm6 = vcmp.eq.f32.partialorder %v2024_v25, 8.507059e+37 }
 0x52d   : > { %v1498_v23 = vpop.f32.mrf.mxu3  ;;  %v2454_v24 = vmul.f32 -1.442695, %v1564_v21  ;;  %2198 = vst [vmem:[%s3575_s19 + $0x90] sm:$0xff] %v1983_v2  ;;  %v2028_v34 = vsel %vm2025_vm6, %v2027_v60, %v2023_v32  ;;  %2670 = vpow2.f32 %v2451_v28  ;;  %v2009_v41 = vand.u32 2147483647, %v3833_v17 }
 0x52e   : > { %v2663_v33 = vpop.eup %2662  ;;  %v1499_v8 = vadd.f32 %v1498_v23, %v3556_v57  ;;  %2201 = vst [vmem:[%s3575_s19 + $0xa8] sm:$0xff] %v2028_v34  ;;  %v2011_v14 = vand.u32 2147483648, %v3833_v17  ;;  %vm2005_vm7 = vweird.f32 %v3833_v17 }
 0x52f   : > { %v2665_v30 = vpop.eup %2664  ;;  %v3848_v35 = vadd.f32 1.0, %v2663_v33  ;;  %2672 = vpow2.f32 %v2454_v24  ;;  %v1566_v37 = vpop.f32.mrf.mxu0  ;;  %vm3868_vm9 = vcmp.eq.f32.partialorder %v2009_v41, 8.507059e+37 }
 0x530   : > { %v3850_v36 = vadd.f32 1.0, %v2665_v30  ;;  %v2453_v29 = vmul.f32 -1.442695, %v1499_v8  ;;  %v1567_v31 = vadd.f32 %v1566_v37, %v3553_v50  ;;  %v2012_v53 = vor.u32 1.1754944e-38, %v2011_v14 }
 0x531   : > { %v2667_v39 = vpop.eup %2666  ;;  %2674 = vrcp.f32 %v3848_v35  ;;  %v2054_v45 = vand.u32 2147483647, %v3848_v35  ;;  %v2056_v18 = vand.u32 2147483648, %v3848_v35  ;;  %vm2050_vm10 = vweird.f32 %v3848_v35 }
 0x532   : > { %v2669_v40 = vpop.eup %2668  ;;  %v2001_v38 = vmul.f32 %v2667_v39, %v3833_v17  ;;  %2676 = vrcp.f32 %v3850_v36  ;;  %v2039_v46 = vand.u32 2147483647, %v3850_v36  ;;  %vm2006_vm8 = vweird.f32 %v2667_v39 }
 0x533   : > { %v2671_v42 = vpop.eup %2670  ;;  %v3859_v44 = vadd.f32 1.0, %v2669_v40  ;;  %2678 = vpow2.f32 %v2453_v29  ;;  %v2041_v25 = vand.u32 2147483648, %v3850_v36  ;;  %v2456_v55 = vmul.f32 -1.442695, %v1567_v31  ;;  %vm2007_vm12 = vmor %vm2005_vm7, %vm2006_vm8 }
 0x534   : > { %v2002_v43 = vsub.f32 1.0, %v2001_v38  ;;  %v3864_v47 = vadd.f32 1.0, %v2671_v42  ;;  %vm2035_vm11 = vweird.f32 %v3850_v36  ;;  %vm3878_vm13 = vcmp.eq.f32.partialorder %v2054_v45, 8.507059e+37 }
 0x535   : > { %v2673_v22 = vpop.eup %2672  ;;  %2680 = vrcp.f32 %v3859_v44  ;;  %v2057_v62 = vor.u32 1.1754944e-38, %v2056_v18  ;;  %vm3883_vm14 = vcmp.eq.f32.partialorder %v2039_v46, 8.507059e+37  ;;  %v1501_v63 = vpop.f32.mrf.mxu3  ;;  %v2042_v7 = vor.u32 1.1754944e-38, %v2041_v25 }
 0x536   : > { %v2003_v48 = vmul.f32 %v2667_v39, %v2002_v43  ;;  %2682 = vrcp.f32 %v3864_v47  ;;  %v3887_v9 = vadd.f32 1.0, %v2673_v22  ;;  %v1502_v13 = vadd.f32 %v1501_v63, %v3556_v57 }
 0x537   : > { %v2675_v49 = vpop.eup %2674  ;;  %2684 = vpow2.f32 %v2456_v55  ;;  %vm2080_vm1 = vweird.f32 %v3859_v44  ;;  %v2084_v20 = vand.u32 2147483647, %v3859_v44  ;;  %v2086_v21 = vand.u32 2147483648, %v3859_v44  ;;  %v1569_v45 = vpop.f32.mrf.mxu0 }
 0x538   : > { %v2677_v58 = vpop.eup %2676  ;;  %v2004_v54 = vadd.f32 %v2667_v39, %v2003_v48  ;;  %v2046_v61 = vmul.f32 %v2675_v49, %v3848_v35  ;;  %vm2051_vm15 = vweird.f32 %v2675_v49  ;;  %2686 = vrcp.f32 %v3887_v9 }
 0x539   : > { %v2031_v0 = vmul.f32 %v2677_v58, %v3850_v36  ;;  %v2679_v4 = vpop.eup %2678  ;;  %vm2036_vm0 = vweird.f32 %v2677_v58  ;;  %vm2052_vm2 = vmor %vm2050_vm10, %vm2051_vm15  ;;  %vm2065_vm3 = vweird.f32 %v3864_v47  ;;  %v2069_v28 = vand.u32 2147483647, %v3864_v47 }
 0x53a   : > { %v2008_v5 = vsel %vm2007_vm12, %v2667_v39, %v2004_v54  ;;  %v2047_v6 = vsub.f32 1.0, %v2046_v61  ;;  %v3891_v1 = vadd.f32 1.0, %v2679_v4  ;;  %vm2037_vm4 = vmor %vm2035_vm11, %vm2036_vm0  ;;  %v2071_v2 = vand.u32 2147483648, %v3864_v47 }
 0x53b   : > { %v2013_v10 = vsel %vm3868_vm9, %v2012_v53, %v2008_v5  ;;  %v2032_v12 = vsub.f32 1.0, %v2031_v0  ;;  %v2681_v11 = vpop.eup %2680  ;;  %vm3917_vm7 = vcmp.eq.f32.partialorder %v2084_v20, 8.507059e+37  ;;  %v2116_v40 = vand.u32 2147483648, %v3887_v9 }
 0x53c   : > { %2200 = vst [vmem:[%s3575_s19 + $0xa0] sm:$0xff] %v2013_v10  ;;  %v2048_v52 = vmul.f32 %v2675_v49, %v2047_v6  ;;  %v2683_v16 = vpop.eup %2682  ;;  %v2076_v3 = vmul.f32 %v2681_v11, %v3859_v44  ;;  %2688 = vrcp.f32 %v3891_v1  ;;  %vm2081_vm5 = vweird.f32 %v2681_v11 }
 0x53d   : > { %v2033_v17 = vmul.f32 %v2677_v58, %v2032_v12  ;;  %v2061_v15 = vmul.f32 %v2683_v16, %v3864_v47  ;;  %v2685_v32 = vpop.eup %2684  ;;  %vm2066_vm6 = vweird.f32 %v2683_v16  ;;  %vm2082_vm8 = vmor %vm2080_vm1, %vm2081_vm5  ;;  %v2087_v38 = vor.u32 1.1754944e-38, %v2086_v21  ;;  %v1504_v18 = vpop.f32.mrf.mxu3 }
 0x53e   : > { %v2049_v19 = vadd.f32 %v2675_v49, %v2048_v52  ;;  %v2077_v23 = vsub.f32 1.0, %v2076_v3  ;;  %v2687_v8 = vpop.eup %2686  ;;  %v3914_v36 = vadd.f32 1.0, %v2685_v32  ;;  %vm2070_vm9 = vcmp.eq.f32.partialorder %v2069_v28, 8.507059e+37  ;;  %vm2067_vm10 = vmor %vm2065_vm3, %vm2066_vm6 }
 0x53f   : > { %v2034_v56 = vadd.f32 %v2677_v58, %v2033_v17  ;;  %v2062_v60 = vsub.f32 1.0, %v2061_v15  ;;  %v2106_v39 = vmul.f32 %v2687_v8, %v3887_v9  ;;  %v2072_v42 = vor.u32 1.1754944e-38, %v2071_v2 }
 0x540   : > { %v2053_v26 = vsel %vm2052_vm2, %v2675_v49, %v2049_v19  ;;  %v2078_v34 = vmul.f32 %v2681_v11, %v2077_v23  ;;  %2690 = vrcp.f32 %v3914_v36  ;;  %vm2110_vm11 = vweird.f32 %v3887_v9 }
 0x541   : > { %v2058_v24 = vsel %vm3878_vm13, %v2057_v62, %v2053_v26  ;;  %v2038_v33 = vsel %vm2037_vm4, %v2677_v58, %v2034_v56  ;;  %v2063_v35 = vmul.f32 %v2683_v16, %v2062_v60  ;;  %v2107_v43 = vsub.f32 1.0, %v2106_v39 }
 0x542   : > { %2203 = vst [vmem:[%s3575_s19 + $0xb8] sm:$0xff] %v2058_v24  ;;  %v2043_v30 = vsel %vm3883_vm14, %v2042_v7, %v2038_v33  ;;  %v2079_v29 = vadd.f32 %v2681_v11, %v2078_v34  ;;  %v2689_v14 = vpop.eup %2688  ;;  %v2114_v22 = vand.u32 2147483647, %v3887_v9  ;;  %vm2111_vm12 = vweird.f32 %v2687_v8 }
 0x543   : > { %2202 = vst [vmem:[%s3575_s19 + $0xb0] sm:$0xff] %v2043_v30  ;;  %v2064_v41 = vadd.f32 %v2683_v16, %v2063_v35  ;;  %v2091_v48 = vmul.f32 %v2689_v14, %v3891_v1  ;;  %v2108_v49 = vmul.f32 %v2687_v8, %v2107_v43  ;;  %v2117_v47 = vor.u32 1.1754944e-38, %v2116_v40  ;;  %vm2112_vm14 = vmor %vm2110_vm11, %vm2111_vm12 }
 0x544   : > { %v2083_v31 = vsel %vm2082_vm8, %v2681_v11, %v2079_v29  ;;  %v2455_v53 = vmul.f32 -1.442695, %v1502_v13  ;;  %v1570_v55 = vadd.f32 %v1569_v45, %v3553_v50  ;;  %v1505_v58 = vadd.f32 %v1504_v18, %v3556_v57 }
 0x545   : > { %v2088_v44 = vsel %vm3917_vm7, %v2087_v38, %v2083_v31  ;;  %v2068_v46 = vsel %vm2067_vm10, %v2683_v16, %v2064_v41  ;;  %v2092_v51 = vsub.f32 1.0, %v2091_v48  ;;  %v2109_v54 = vadd.f32 %v2687_v8, %v2108_v49 }
 0x546   : > { %2205 = vst [vmem:[%s3575_s19 + $0xc8] sm:$0xff] %v2088_v44  ;;  %v2073_v25 = vsel %vm2070_vm9, %v2072_v42, %v2068_v46  ;;  %vm2096_vm13 = vweird.f32 %v2689_v14  ;;  %v2099_v61 = vand.u32 2147483647, %v3891_v1  ;;  %v2101_v27 = vand.u32 2147483648, %v3891_v1  ;;  %v2691_v62 = vpop.eup %2690 }
 0x547   : > { %2204 = vst [vmem:[%s3575_s19 + $0xc0] sm:$0xff] %v2073_v25  ;;  %v2093_v0 = vmul.f32 %v2689_v14, %v2092_v51  ;;  %2692 = vpow2.f32 %v2455_v53  ;;  %v2458_v59 = vmul.f32 -1.442695, %v1570_v55  ;;  %v2457_v63 = vmul.f32 -1.442695, %v1505_v58 }
 0x548   : > { %v2113_v4 = vsel %vm2112_vm14, %v2687_v8, %v2109_v54  ;;  %vm2115_vm15 = vcmp.eq.f32.partialorder %v2114_v22, 8.507059e+37  ;;  %v2136_v50 = vmul.f32 %v2691_v62, %v3914_v36  ;;  %vm2095_vm0 = vweird.f32 %v3891_v1 }
 0x549   : > { %v2118_v57 = vsel %vm2115_vm15, %v2117_v47, %v2113_v4  ;;  %v2094_v5 = vadd.f32 %v2689_v14, %v2093_v0  ;;  %2694 = vpow2.f32 %v2458_v59  ;;  %vm2097_vm1 = vmor %vm2095_vm0, %vm2096_vm13  ;;  %v2102_v6 = vor.u32 1.1754944e-38, %v2101_v27 }
 0x54a   : > { %2207 = vst [vmem:[%s3575_s19 + $0xd8] sm:$0xff] %v2118_v57  ;;  %v2137_v7 = vsub.f32 1.0, %v2136_v50  ;;  %2696 = vpow2.f32 %v2457_v63  ;;  %vm2100_vm2 = vcmp.eq.f32.partialorder %v2099_v61, 8.507059e+37  ;;  %v2146_v10 = vand.u32 2147483648, %v3914_v36 }
 0x54b   : > { %v2098_v9 = vsel %vm2097_vm1, %v2689_v14, %v2094_v5  ;;  %vm2141_vm3 = vweird.f32 %v2691_v62  ;;  %v2144_v52 = vand.u32 2147483647, %v3914_v36  ;;  %vm2140_vm4 = vweird.f32 %v3914_v36 }
 0x54c   : > { %v2103_v12 = vsel %vm2100_vm2, %v2102_v6, %v2098_v9  ;;  %v2138_v11 = vmul.f32 %v2691_v62, %v2137_v7  ;;  %vm2142_vm5 = vmor %vm2140_vm4, %vm2141_vm3  ;;  %v2147_v3 = vor.u32 1.1754944e-38, %v2146_v10 }
 0x54d   : > { %v2693_v13 = vpop.eup %2692  ;;  %2206 = vst [vmem:[%s3575_s19 + $0xd0] sm:$0xff] %v2103_v12  ;;  %vm2145_vm6 = vcmp.eq.f32.partialorder %v2144_v52, 8.507059e+37 }
 0x54e   : > { %v2139_v1 = vadd.f32 %v2691_v62, %v2138_v11  ;;  %v1696_v16 = vadd.f32 1.0, %v2693_v13 }
 0x54f   : > { %v2695_v17 = vpop.eup %2694 }
 0x550   : > { %v2697_v19 = vpop.eup %2696  ;;  %v2143_v20 = vsel %vm2142_vm5, %v2691_v62, %v2139_v1  ;;  %2698 = vrcp.f32 %v1696_v16  ;;  %v1699_v15 = vadd.f32 1.0, %v2695_v17  ;;  %v2129_v60 = vand.u32 2147483647, %v1696_v16 }
 0x551   : > { %v2148_v21 = vsel %vm2145_vm6, %v2147_v3, %v2143_v20  ;;  %v1698_v56 = vadd.f32 1.0, %v2697_v19  ;;  %v2131_v32 = vand.u32 2147483648, %v1696_v16  ;;  %vm2125_vm8 = vweird.f32 %v1696_v16 }
 0x552   : > { %2209 = vst [vmem:[%s3575_s19 + $0xe8] sm:$0xff] %v2148_v21  ;;  %2700 = vrcp.f32 %v1699_v15  ;;  %vm3951_vm9 = vcmp.eq.f32.partialorder %v2129_v60, 8.507059e+37  ;;  %v2176_v37 = vand.u32 2147483648, %v1699_v15  ;;  %v2174_v38 = vand.u32 2147483647, %v1699_v15 }
 0x553   : > { %2702 = vrcp.f32 %v1698_v56  ;;  %v2132_v29 = vor.u32 1.1754944e-38, %v2131_v32  ;;  %v2161_v41 = vand.u32 2147483648, %v1698_v56  ;;  %v2159_v42 = vand.u32 2147483647, %v1698_v56 }
 0x554   : > { %vm2170_vm13 = vweird.f32 %v1699_v15  ;;  %v2177_v18 = vor.u32 1.1754944e-38, %v2176_v37  ;;  %vm2155_vm15 = vweird.f32 %v1698_v56  ;;  %vm2175_vm0 = vcmp.eq.f32.partialorder %v2174_v38, 8.507059e+37 }
 0x555   : > { %v2162_v22 = vor.u32 1.1754944e-38, %v2161_v41  ;;  %vm2160_vm2 = vcmp.eq.f32.partialorder %v2159_v42, 8.507059e+37 }
 0x556   : > { %v2699_v23 = vpop.eup %2698 }
 0x557   : > { %v2121_v26 = vmul.f32 %v2699_v23, %v1696_v16  ;;  %vm2126_vm7 = vweird.f32 %v2699_v23 }
 0x558   : > { %v2701_v28 = vpop.eup %2700  ;;  %vm2127_vm10 = vmor %vm2125_vm8, %vm2126_vm7 }
 0x559   : > { %v2122_v2 = vsub.f32 1.0, %v2121_v26  ;;  %v2703_v24 = vpop.eup %2702  ;;  %v2166_v33 = vmul.f32 %v2701_v28, %v1699_v15  ;;  %vm2171_vm11 = vweird.f32 %v2701_v28 }
 0x55a   : > { %v2151_v8 = vmul.f32 %v2703_v24, %v1698_v56  ;;  %vm2156_vm12 = vweird.f32 %v2703_v24  ;;  %vm2172_vm14 = vmor %vm2170_vm13, %vm2171_vm11 }
 0x55b   : > { %v2123_v34 = vmul.f32 %v2699_v23, %v2122_v2  ;;  %v2167_v35 = vsub.f32 1.0, %v2166_v33  ;;  %vm2157_vm1 = vmor %vm2155_vm15, %vm2156_vm12 }
 0x55c   : > { %v2152_v39 = vsub.f32 1.0, %v2151_v8 }
 0x55d   : > { %v2124_v36 = vadd.f32 %v2699_v23, %v2123_v34  ;;  %v2168_v40 = vmul.f32 %v2701_v28, %v2167_v35 }
 0x55e   : > { %v2153_v31 = vmul.f32 %v2703_v24, %v2152_v39 }
 0x55f   : > { %v2128_v14 = vsel %vm2127_vm10, %v2699_v23, %v2124_v36  ;;  %v2169_v45 = vadd.f32 %v2701_v28, %v2168_v40 }
 0x560   : > { %v2133_v43 = vsel %vm3951_vm9, %v2132_v29, %v2128_v14  ;;  %v2154_v44 = vadd.f32 %v2703_v24, %v2153_v31 }
 0x561   : > { %2208 = vst [vmem:[%s3575_s19 + $0xe0] sm:$0xff] %v2133_v43  ;;  %v2173_v46 = vsel %vm2172_vm14, %v2701_v28, %v2169_v45 }
 0x562   : > { %v2178_v48 = vsel %vm2175_vm0, %v2177_v18, %v2173_v46  ;;  %v2158_v25 = vsel %vm2157_vm1, %v2703_v24, %v2154_v44 }
 0x563   : > { %2211 = vst [vmem:[%s3575_s19 + $0xf8] sm:$0xff] %v2178_v48  ;;  %v2163_v49 = vsel %vm2160_vm2, %v2162_v22, %v2158_v25 }
 0x564   : > { %2210 = vst [vmem:[%s3575_s19 + $0xf0] sm:$0xff] %v2163_v49 }
 0x565   : > { %2851 = shalt.err (!%p2848_p10)
}
 0x566   : > { %s2907_s29 = smov 256   ;;  %s2908_s19 = smov 16  }
 0x567   : > { %2507 = dma.vmem_to_hbm [thread:$0]  (%p3049_p3), %s2227_s17, 4096, %s2229_s11, %s2213_s28, %s2907_s29, %s2907_s29, %s2908_s19  }
 0x568 PF: > { %s2243_s9 = sand.u32 1, %s2886_s13   ;;  %p4056_p12 = scmp.ge.s32.totalorder %s2898_s16, 2 }
 0x569   : > { %s2244_s6 = scalar_lea.sflag [#allocation4], %s2243_s9 }
 0x56a   : > { %p2524_p13 = pnand %p4056_p12, %p2999_p6 }
 0x56c   : > { %p2525_p0 = pneg %p2524_p13 }
 0x56e   : > { %2881 = dma.done.wait (%p2525_p0), %s2244_s6, 4096  }
 0x56f   : > { %2883 = vsyncadd (%p2525_p0), %s2244_s6, 4294963200  ;;  %s4057_s27 = sld [smem:[#allocation15_spill]]  ;;  %p25_p5 = scmp.ge.s32.totalorder %s3036_s12, 4  }
 0x570   : > { %s4058_s13 = smov %s2890_s14  ;;  %s4059_s14 = smov %s2894_s15 }
 0x571   : > { %s4061_s16 = smov %s3036_s12  ;;  %27 = sbr.rel (!%p25_p5) target bundleno = 11 (0xb), region = 118 }
 0x575   : > { %s4060_s15 = smov %s4057_s27 }
 0x576   :  { %2250 = vsyncpa [#allocation3], 1 }
 0x577   :  { %2252 = vsyncpa [#allocation3 + $0x1], 1 }
 0x578   :  { %2253 = vsyncpa [#allocation6], 1 }
 0x579   :  { %2254 = vsyncpa [#allocation9], 1 }
 0x57a   :  { %2255 = vsyncpa [#allocation4], 1 }
 0x57b   :  { %2257 = vsyncpa [#allocation4 + $0x1], 1 }

</bundles_post_ra>
